<compile_context>
chip_gen: v7x
topology: tpu7x:2x2x1
jax: 0.10.0
libtpu: 0.0.40
codegen_flags: <defaults>
</compile_context>

<pallas_src>
import functools
import math

import jax
import jax.numpy as jnp
from jax.experimental import pallas as pl
from jax.experimental.pallas import tpu as pltpu


def _down_kernel(G, H2, W2, c_in, c_out,
                 x_ref, w1_ref, b1_ref, w2_ref, b2_ref,
                 out_ref, pad1_ref, pad2_ref):
    """One grid step = G batch samples.

    x_ref   : (G, 4, H2, W2, c_in)    pre-split 2x2 pooling offsets (NHWC)
    w1_ref  : (9*c_in, c_out)         conv1 im2col weights, BN1 folded in
    b1_ref  : (1, c_out)              conv1 bias, BN1 folded in (f32)
    w2_ref  : (9*c_out, c_out)        conv2 im2col weights, BN2 folded in
    b2_ref  : (1, c_out)              conv2 bias, BN2 folded in (f32)
    out_ref : (G*H2*W2, c_out)        natural matmul layout (f32)
    pad1_ref: (G, H2+2, W2+2, c_in)   zero-padded conv1 input scratch
    pad2_ref: (G, H2+2, W2+2, c_out)  zero-padded conv2 input scratch
    """
    M = G * H2 * W2
    Hp, Wp = H2 + 2, W2 + 2

    def zero_border(ref, c):
        # Scratch is per-core under megacore "parallel" partitioning, so the
        # cheap-and-safe option is to rewrite only the 1-pixel zero border
        # every step (the interior is fully rewritten below anyway).
        z_row = jnp.zeros((G, 1, Wp, c), ref.dtype)
        z_col = jnp.zeros((G, Hp, 1, c), ref.dtype)
        ref[:, 0:1, :, :] = z_row
        ref[:, Hp - 1:Hp, :, :] = z_row
        ref[:, :, 0:1, :] = z_col
        ref[:, :, Wp - 1:Wp, :] = z_col

    def im2col(ref, c):
        # 9 shifted tap views concatenated along channels -> (M, 9*c).
        taps = [ref[:, di:di + H2, dj:dj + W2, :]
                for di in range(3) for dj in range(3)]
        return jnp.concatenate(taps, axis=-1).reshape(M, 9 * c)

    zero_border(pad1_ref, c_in)
    zero_border(pad2_ref, c_out)

    # --- MaxPool2d(2): elementwise max over the 4 pre-split offsets. --------
    x = x_ref[...]
    pooled = jnp.maximum(jnp.maximum(x[:, 0], x[:, 1]),
                         jnp.maximum(x[:, 2], x[:, 3]))     # (G, H2, W2, c_in)

    # --- Conv1 (3x3, pad=1) + folded BN1 + ReLU: one MXU matmul. ------------
    pad1_ref[:, 1:H2 + 1, 1:W2 + 1, :] = pooled
    cols1 = im2col(pad1_ref, c_in)                          # (M, 9*c_in)
    y1 = jnp.dot(cols1, w1_ref[...], preferred_element_type=jnp.float32)
    y1 = jnp.maximum(y1 + b1_ref[...], 0.0)                 # (M, c_out) f32

    # --- Conv2 (3x3, pad=1) + folded BN2 + ReLU: one MXU matmul. ------------
    pad2_ref[:, 1:H2 + 1, 1:W2 + 1, :] = (
        y1.astype(pad2_ref.dtype).reshape(G, H2, W2, c_out))
    cols2 = im2col(pad2_ref, c_out)                         # (M, 9*c_out)
    y2 = jnp.dot(cols2, w2_ref[...], preferred_element_type=jnp.float32)
    out_ref[...] = jnp.maximum(y2 + b2_ref[...], 0.0).astype(out_ref.dtype)


def _fold_bn(w, b, gamma, beta, mean, var, eps, dtype):
    """Fold eval-mode BatchNorm into conv weights/bias.

    w: (O, I, 3, 3) torch OIHW. Returns im2col weights (9*I, O) ordered
    (di, dj, i) to match the kernel's tap concatenation, and bias (1, O).
    """
    o, i = w.shape[0], w.shape[1]
    s = gamma / jnp.sqrt(var + eps)                         # (O,)
    w_f = (jnp.transpose(w, (2, 3, 1, 0)) * s).reshape(9 * i, o).astype(dtype)
    b_f = ((b - mean) * s + beta).reshape(1, o).astype(jnp.float32)
    return w_f, b_f


def _pick_group(B, H2, W2, c_in, c_out, itemsize,
                budget_bytes=20 * 1024 * 1024):
    """Largest divisor of B that (a) keeps the grid length >= 2 (both v7x
    TensorCores get work) and (b) keeps the per-step VMEM footprint under a
    byte budget (double-buffered input/output blocks + scratch + temporaries)."""
    g_cap = max(1, B // 2)
    best = 1
    for g in range(1, g_cap + 1):
        if B % g:
            continue
        in_blk = g * 4 * H2 * W2 * c_in * itemsize
        out_blk = g * H2 * W2 * c_out * 4
        pads = g * (H2 + 2) * (W2 + 2) * (c_in + c_out) * itemsize
        cols = g * H2 * W2 * 9 * (c_in + c_out) * itemsize
        weights = (9 * c_in * c_out + 9 * c_out * c_out + 2 * c_out) * 4
        total = 2 * (in_blk + out_blk) + pads + cols + weights
        if total <= budget_bytes:
            best = g
    return best


def down_pallas(x, params, eps=1e-5, compute_dtype=jnp.float32):
    """Pallas equivalent of Down(in_channels, out_channels).forward(x), NCHW."""
    B, C_in, H, W = x.shape
    assert H % 2 == 0 and W % 2 == 0, "MaxPool2d(2) path assumes even H, W"
    H2, W2 = H // 2, W // 2
    C_out = params["w1"].shape[0]

    w1f, b1f = _fold_bn(params["w1"], params["b1"], params["gamma1"],
                        params["beta1"], params["mean1"], params["var1"],
                        eps, compute_dtype)
    w2f, b2f = _fold_bn(params["w2"], params["b2"], params["gamma2"],
                        params["beta2"], params["mean2"], params["var2"],
                        eps, compute_dtype)

    # Layout plumbing in the wrapper (XLA): NCHW -> NHWC, and pre-split the
    # 2x2 pooling window onto a leading axis of size 4 so the kernel's maxpool
    # needs no strided / unaligned lane accesses.
    x_nhwc = jnp.transpose(x, (0, 2, 3, 1)).astype(compute_dtype)
    x4 = x_nhwc.reshape(B, H2, 2, W2, 2, C_in).transpose(0, 2, 4, 1, 3, 5)
    x4 = x4.reshape(B, 4, H2, W2, C_in)

    itemsize = jnp.dtype(compute_dtype).itemsize
    G = _pick_group(B, H2, W2, C_in, C_out, itemsize)
    M = G * H2 * W2
    kernel = functools.partial(_down_kernel, G, H2, W2, C_in, C_out)

    out_flat = pl.pallas_call(
        kernel,
        out_shape=jax.ShapeDtypeStruct((B * H2 * W2, C_out), jnp.float32),
        grid=(B // G,),
        in_specs=[
            pl.BlockSpec((G, 4, H2, W2, C_in), lambda i: (i, 0, 0, 0, 0)),
            pl.BlockSpec((9 * C_in, C_out), lambda i: (0, 0)),
            pl.BlockSpec((1, C_out), lambda i: (0, 0)),
            pl.BlockSpec((9 * C_out, C_out), lambda i: (0, 0)),
            pl.BlockSpec((1, C_out), lambda i: (0, 0)),
        ],
        out_specs=pl.BlockSpec((M, C_out), lambda i: (i, 0)),
        scratch_shapes=[
            pltpu.VMEM((G, H2 + 2, W2 + 2, C_in), compute_dtype),
            pltpu.VMEM((G, H2 + 2, W2 + 2, C_out), compute_dtype),
        ],
        compiler_params=pltpu.CompilerParams(
            dimension_semantics=("parallel",),
            vmem_limit_bytes=32 * 1024 * 1024),
    )(x4, w1f, b1f, w2f, b2f)

    out_nhwc = out_flat.reshape(B, H2, W2, C_out)
    return jnp.transpose(out_nhwc, (0, 3, 1, 2))            # back to NCHW


def down_reference(x, params, eps=1e-5):
    """Pure-JAX reference (eval-mode BN) for correctness checking."""
    x = x.astype(jnp.float32)
    B, C, H, W = x.shape
    y = x.reshape(B, C, H // 2, 2, W // 2, 2).max(axis=(3, 5))   # MaxPool2d(2)

    def conv_bn_relu(z, w, b, gamma, beta, mean, var):
        z = jax.lax.conv_general_dilated(
            z, w, window_strides=(1, 1), padding=((1, 1), (1, 1)),
            dimension_numbers=("NCHW", "OIHW", "NCHW"))
        z = z + b[None, :, None, None]
        z = (z - mean[None, :, None, None]) / jnp.sqrt(
            var[None, :, None, None] + eps)
        z = z * gamma[None, :, None, None] + beta[None, :, None, None]
        return jnp.maximum(z, 0.0)

    y = conv_bn_relu(y, params["w1"], params["b1"], params["gamma1"],
                     params["beta1"], params["mean1"], params["var1"])
    y = conv_bn_relu(y, params["w2"], params["b2"], params["gamma2"],
                     params["beta2"], params["mean2"], params["var2"])
    return y


def init_down_params(key, c_in, c_out):
    ks = jax.random.split(key, 12)

    def n(k, shape, scale=1.0):
        return scale * jax.random.normal(k, shape, dtype=jnp.float32)

    return dict(
        w1=n(ks[0], (c_out, c_in, 3, 3), 1.0 / math.sqrt(9 * c_in)),
        b1=n(ks[1], (c_out,), 0.1),
        gamma1=1.0 + n(ks[2], (c_out,), 0.1),
        beta1=n(ks[3], (c_out,), 0.1),
        mean1=n(ks[4], (c_out,), 0.1),
        var1=1.0 + jnp.abs(n(ks[5], (c_out,), 0.1)),
        w2=n(ks[6], (c_out, c_out, 3, 3), 1.0 / math.sqrt(9 * c_out)),
        b2=n(ks[7], (c_out,), 0.1),
        gamma2=1.0 + n(ks[8], (c_out,), 0.1),
        beta2=n(ks[9], (c_out,), 0.1),
        mean2=n(ks[10], (c_out,), 0.1),
        var2=1.0 + jnp.abs(n(ks[11], (c_out,), 0.1)),
    )


if __name__ == "__main__":
    key = jax.random.PRNGKey(0)
    kx, kp = jax.random.split(key)

    B, C_in, C_out, H, W = 2, 4, 8, 16, 16
    x = jax.random.normal(kx, (B, C_in, H, W), dtype=jnp.float32)
    params = init_down_params(kp, C_in, C_out)

    out = jax.block_until_ready(down_pallas(x, params))
    ref = jax.block_until_ready(down_reference(x, params))

    assert out.shape == (B, C_out, H // 2, W // 2), out.shape
    max_err = float(jnp.max(jnp.abs(out - ref)))
    assert jnp.allclose(out, ref, rtol=1e-4, atol=1e-4), max_err
    print("KERNEL_OK")
</pallas_src>

<mosaic_0001>
module attributes {stable_mosaic.version = 11 : i64} {
  func.func @_down_kernel(%arg0: i32, %arg1: memref<1x4x8x8x4xf32, #tpu.memory_space<vmem>>, %arg2: memref<36x8xf32, #tpu.memory_space<vmem>>, %arg3: memref<1x8xf32, #tpu.memory_space<vmem>>, %arg4: memref<72x8xf32, #tpu.memory_space<vmem>>, %arg5: memref<1x8xf32, #tpu.memory_space<vmem>>, %arg6: memref<64x8xf32, #tpu.memory_space<vmem>>, %arg7: memref<1x10x10x4xf32, #tpu.memory_space<vmem>>, %arg8: memref<1x10x10x8xf32, #tpu.memory_space<vmem>>) attributes {dimension_semantics = [#tpu.dimension_semantics<parallel>], iteration_bounds = array<i64: 2>, scalar_prefetch = 0 : i64, scratch_operands = 2 : i64, tpu.core_type = #tpu.core_type<tc>, window_params = [{transform_indices = @transform_0, window_bounds = array<i64: 1, 4, 8, 8, 4>}, {pipeline_mode = #tpu.pipeline_mode<synchronous>, transform_indices = @transform_1, window_bounds = array<i64: 36, 8>}, {pipeline_mode = #tpu.pipeline_mode<synchronous>, transform_indices = @transform_2, window_bounds = array<i64: 1, 8>}, {pipeline_mode = #tpu.pipeline_mode<synchronous>, transform_indices = @transform_3, window_bounds = array<i64: 72, 8>}, {pipeline_mode = #tpu.pipeline_mode<synchronous>, transform_indices = @transform_4, window_bounds = array<i64: 1, 8>}, {transform_indices = @transform_5, window_bounds = array<i64: 64, 8>}]} {
    %cst = arith.constant 0.000000e+00 : f32
    %0 = vector.broadcast %cst : f32 to vector<1x1x10x4xf32>
    %cst_0 = arith.constant 0.000000e+00 : f32
    %1 = vector.broadcast %cst_0 : f32 to vector<1x10x1x4xf32>
    %c0 = arith.constant 0 : index
    %c0_1 = arith.constant 0 : index
    %c0_2 = arith.constant 0 : index
    %c0_3 = arith.constant 0 : index
    %2 = vector.load %arg7[%c0, %c0_1, %c0_2, %c0_3] : memref<1x10x10x4xf32, #tpu.memory_space<vmem>>, vector<1x1x10x4xf32>
    tpu.vector_store %arg7[%c0, %c0_1, %c0_2, %c0_3], %0 {strides = array<i32>} : memref<1x10x10x4xf32, #tpu.memory_space<vmem>>, vector<1x1x10x4xf32>,
    %c0_4 = arith.constant 0 : index
    %c9 = arith.constant 9 : index
    %c0_5 = arith.constant 0 : index
    %c0_6 = arith.constant 0 : index
    %3 = vector.load %arg7[%c0_4, %c9, %c0_5, %c0_6] : memref<1x10x10x4xf32, #tpu.memory_space<vmem>>, vector<1x1x10x4xf32>
    tpu.vector_store %arg7[%c0_4, %c9, %c0_5, %c0_6], %0 {strides = array<i32>} : memref<1x10x10x4xf32, #tpu.memory_space<vmem>>, vector<1x1x10x4xf32>,
    %c0_7 = arith.constant 0 : index
    %c0_8 = arith.constant 0 : index
    %c0_9 = arith.constant 0 : index
    %c0_10 = arith.constant 0 : index
    %4 = vector.load %arg7[%c0_7, %c0_8, %c0_9, %c0_10] : memref<1x10x10x4xf32, #tpu.memory_space<vmem>>, vector<1x10x1x4xf32>
    tpu.vector_store %arg7[%c0_7, %c0_8, %c0_9, %c0_10], %1 {strides = array<i32>} : memref<1x10x10x4xf32, #tpu.memory_space<vmem>>, vector<1x10x1x4xf32>,
    %c0_11 = arith.constant 0 : index
    %c0_12 = arith.constant 0 : index
    %c9_13 = arith.constant 9 : index
    %c0_14 = arith.constant 0 : index
    %5 = vector.load %arg7[%c0_11, %c0_12, %c9_13, %c0_14] : memref<1x10x10x4xf32, #tpu.memory_space<vmem>>, vector<1x10x1x4xf32>
    tpu.vector_store %arg7[%c0_11, %c0_12, %c9_13, %c0_14], %1 {strides = array<i32>} : memref<1x10x10x4xf32, #tpu.memory_space<vmem>>, vector<1x10x1x4xf32>,
    %cst_15 = arith.constant 0.000000e+00 : f32
    %6 = vector.broadcast %cst_15 : f32 to vector<1x1x10x8xf32>
    %cst_16 = arith.constant 0.000000e+00 : f32
    %7 = vector.broadcast %cst_16 : f32 to vector<1x10x1x8xf32>
    %c0_17 = arith.constant 0 : index
    %c0_18 = arith.constant 0 : index
    %c0_19 = arith.constant 0 : index
    %c0_20 = arith.constant 0 : index
    %8 = vector.load %arg8[%c0_17, %c0_18, %c0_19, %c0_20] : memref<1x10x10x8xf32, #tpu.memory_space<vmem>>, vector<1x1x10x8xf32>
    tpu.vector_store %arg8[%c0_17, %c0_18, %c0_19, %c0_20], %6 {strides = array<i32>} : memref<1x10x10x8xf32, #tpu.memory_space<vmem>>, vector<1x1x10x8xf32>,
    %c0_21 = arith.constant 0 : index
    %c9_22 = arith.constant 9 : index
    %c0_23 = arith.constant 0 : index
    %c0_24 = arith.constant 0 : index
    %9 = vector.load %arg8[%c0_21, %c9_22, %c0_23, %c0_24] : memref<1x10x10x8xf32, #tpu.memory_space<vmem>>, vector<1x1x10x8xf32>
    tpu.vector_store %arg8[%c0_21, %c9_22, %c0_23, %c0_24], %6 {strides = array<i32>} : memref<1x10x10x8xf32, #tpu.memory_space<vmem>>, vector<1x1x10x8xf32>,
    %c0_25 = arith.constant 0 : index
    %c0_26 = arith.constant 0 : index
    %c0_27 = arith.constant 0 : index
    %c0_28 = arith.constant 0 : index
    %10 = vector.load %arg8[%c0_25, %c0_26, %c0_27, %c0_28] : memref<1x10x10x8xf32, #tpu.memory_space<vmem>>, vector<1x10x1x8xf32>
    tpu.vector_store %arg8[%c0_25, %c0_26, %c0_27, %c0_28], %7 {strides = array<i32>} : memref<1x10x10x8xf32, #tpu.memory_space<vmem>>, vector<1x10x1x8xf32>,
    %c0_29 = arith.constant 0 : index
    %c0_30 = arith.constant 0 : index
    %c9_31 = arith.constant 9 : index
    %c0_32 = arith.constant 0 : index
    %11 = vector.load %arg8[%c0_29, %c0_30, %c9_31, %c0_32] : memref<1x10x10x8xf32, #tpu.memory_space<vmem>>, vector<1x10x1x8xf32>
    tpu.vector_store %arg8[%c0_29, %c0_30, %c9_31, %c0_32], %7 {strides = array<i32>} : memref<1x10x10x8xf32, #tpu.memory_space<vmem>>, vector<1x10x1x8xf32>,
    %c0_33 = arith.constant 0 : index
    %c0_34 = arith.constant 0 : index
    %c0_35 = arith.constant 0 : index
    %c0_36 = arith.constant 0 : index
    %c0_37 = arith.constant 0 : index
    %12 = vector.load %arg1[%c0_33, %c0_34, %c0_35, %c0_36, %c0_37] : memref<1x4x8x8x4xf32, #tpu.memory_space<vmem>>, vector<1x4x8x8x4xf32>
    %13 = vector.extract_strided_slice %12 {offsets = [0, 0, 0, 0, 0], sizes = [1, 1, 8, 8, 4], strides = [1, 1, 1, 1, 1]} : vector<1x4x8x8x4xf32> to vector<1x1x8x8x4xf32>
    %14 = vector.shape_cast %13 : vector<1x1x8x8x4xf32> to vector<1x8x8x4xf32>
    %15 = vector.extract_strided_slice %12 {offsets = [0, 1, 0, 0, 0], sizes = [1, 1, 8, 8, 4], strides = [1, 1, 1, 1, 1]} : vector<1x4x8x8x4xf32> to vector<1x1x8x8x4xf32>
    %16 = vector.shape_cast %15 : vector<1x1x8x8x4xf32> to vector<1x8x8x4xf32>
    %17 = arith.maximumf %14, %16 : vector<1x8x8x4xf32>
    %18 = vector.extract_strided_slice %12 {offsets = [0, 2, 0, 0, 0], sizes = [1, 1, 8, 8, 4], strides = [1, 1, 1, 1, 1]} : vector<1x4x8x8x4xf32> to vector<1x1x8x8x4xf32>
    %19 = vector.shape_cast %18 : vector<1x1x8x8x4xf32> to vector<1x8x8x4xf32>
    %20 = vector.extract_strided_slice %12 {offsets = [0, 3, 0, 0, 0], sizes = [1, 1, 8, 8, 4], strides = [1, 1, 1, 1, 1]} : vector<1x4x8x8x4xf32> to vector<1x1x8x8x4xf32>
    %21 = vector.shape_cast %20 : vector<1x1x8x8x4xf32> to vector<1x8x8x4xf32>
    %22 = arith.maximumf %19, %21 : vector<1x8x8x4xf32>
    %23 = arith.maximumf %17, %22 : vector<1x8x8x4xf32>
    %c0_38 = arith.constant 0 : index
    %c1 = arith.constant 1 : index
    %c1_39 = arith.constant 1 : index
    %c0_40 = arith.constant 0 : index
    %24 = vector.load %arg7[%c0_38, %c1, %c1_39, %c0_40] : memref<1x10x10x4xf32, #tpu.memory_space<vmem>>, vector<1x8x8x4xf32>
    tpu.vector_store %arg7[%c0_38, %c1, %c1_39, %c0_40], %23 {strides = array<i32>} : memref<1x10x10x4xf32, #tpu.memory_space<vmem>>, vector<1x8x8x4xf32>,
    %c0_41 = arith.constant 0 : index
    %c0_42 = arith.constant 0 : index
    %c0_43 = arith.constant 0 : index
    %c0_44 = arith.constant 0 : index
    %25 = vector.load %arg7[%c0_41, %c0_42, %c0_43, %c0_44] : memref<1x10x10x4xf32, #tpu.memory_space<vmem>>, vector<1x8x8x4xf32>
    %c0_45 = arith.constant 0 : index
    %c0_46 = arith.constant 0 : index
    %c1_47 = arith.constant 1 : index
    %c0_48 = arith.constant 0 : index
    %26 = vector.load %arg7[%c0_45, %c0_46, %c1_47, %c0_48] : memref<1x10x10x4xf32, #tpu.memory_space<vmem>>, vector<1x8x8x4xf32>
    %c0_49 = arith.constant 0 : index
    %c0_50 = arith.constant 0 : index
    %c2 = arith.constant 2 : index
    %c0_51 = arith.constant 0 : index
    %27 = vector.load %arg7[%c0_49, %c0_50, %c2, %c0_51] : memref<1x10x10x4xf32, #tpu.memory_space<vmem>>, vector<1x8x8x4xf32>
    %c0_52 = arith.constant 0 : index
    %c1_53 = arith.constant 1 : index
    %c0_54 = arith.constant 0 : index
    %c0_55 = arith.constant 0 : index
    %28 = vector.load %arg7[%c0_52, %c1_53, %c0_54, %c0_55] : memref<1x10x10x4xf32, #tpu.memory_space<vmem>>, vector<1x8x8x4xf32>
    %c0_56 = arith.constant 0 : index
    %c1_57 = arith.constant 1 : index
    %c1_58 = arith.constant 1 : index
    %c0_59 = arith.constant 0 : index
    %29 = vector.load %arg7[%c0_56, %c1_57, %c1_58, %c0_59] : memref<1x10x10x4xf32, #tpu.memory_space<vmem>>, vector<1x8x8x4xf32>
    %c0_60 = arith.constant 0 : index
    %c1_61 = arith.constant 1 : index
    %c2_62 = arith.constant 2 : index
    %c0_63 = arith.constant 0 : index
    %30 = vector.load %arg7[%c0_60, %c1_61, %c2_62, %c0_63] : memref<1x10x10x4xf32, #tpu.memory_space<vmem>>, vector<1x8x8x4xf32>
    %c0_64 = arith.constant 0 : index
    %c2_65 = arith.constant 2 : index
    %c0_66 = arith.constant 0 : index
    %c0_67 = arith.constant 0 : index
    %31 = vector.load %arg7[%c0_64, %c2_65, %c0_66, %c0_67] : memref<1x10x10x4xf32, #tpu.memory_space<vmem>>, vector<1x8x8x4xf32>
    %c0_68 = arith.constant 0 : index
    %c2_69 = arith.constant 2 : index
    %c1_70 = arith.constant 1 : index
    %c0_71 = arith.constant 0 : index
    %32 = vector.load %arg7[%c0_68, %c2_69, %c1_70, %c0_71] : memref<1x10x10x4xf32, #tpu.memory_space<vmem>>, vector<1x8x8x4xf32>
    %c0_72 = arith.constant 0 : index
    %c2_73 = arith.constant 2 : index
    %c2_74 = arith.constant 2 : index
    %c0_75 = arith.constant 0 : index
    %33 = vector.load %arg7[%c0_72, %c2_73, %c2_74, %c0_75] : memref<1x10x10x4xf32, #tpu.memory_space<vmem>>, vector<1x8x8x4xf32>
    %34 = tpu.concatenate %25, %26, %27, %28, %29, %30, %31, %32, %33 in 3 : vector<1x8x8x4xf32>, vector<1x8x8x4xf32>, vector<1x8x8x4xf32>, vector<1x8x8x4xf32>, vector<1x8x8x4xf32>, vector<1x8x8x4xf32>, vector<1x8x8x4xf32>, vector<1x8x8x4xf32>, vector<1x8x8x4xf32> -> vector<1x8x8x36xf32>
    %35 = vector.shape_cast %34 : vector<1x8x8x36xf32> to vector<64x36xf32>
    %c0_76 = arith.constant 0 : index
    %c0_77 = arith.constant 0 : index
    %36 = vector.load %arg2[%c0_76, %c0_77] : memref<36x8xf32, #tpu.memory_space<vmem>>, vector<36x8xf32>
    %cst_78 = arith.constant dense<0.000000e+00> : vector<64x8xf32>
    %37 = tpu.matmul %35, %36, %cst_78 {dimension_numbers = #tpu.dot_dimension_numbers<[1], [0], [0], [1], [0, 0, 1, 1], [], []>} : vector<64x36xf32>, vector<36x8xf32>, vector<64x8xf32> -> vector<64x8xf32>
    %c0_79 = arith.constant 0 : index
    %c0_80 = arith.constant 0 : index
    %38 = vector.load %arg3[%c0_79, %c0_80] : memref<1x8xf32, #tpu.memory_space<vmem>>, vector<1x8xf32>
    %39 = vector.broadcast %38 : vector<1x8xf32> to vector<64x8xf32>
    %40 = arith.addf %37, %39 : vector<64x8xf32>
    %cst_81 = arith.constant 0.000000e+00 : f32
    %41 = vector.broadcast %cst_81 : f32 to vector<64x8xf32>
    %42 = arith.maximumf %40, %41 : vector<64x8xf32>
    %43 = vector.shape_cast %42 : vector<64x8xf32> to vector<1x8x8x8xf32>
    %c0_82 = arith.constant 0 : index
    %c1_83 = arith.constant 1 : index
    %c1_84 = arith.constant 1 : index
    %c0_85 = arith.constant 0 : index
    %44 = vector.load %arg8[%c0_82, %c1_83, %c1_84, %c0_85] : memref<1x10x10x8xf32, #tpu.memory_space<vmem>>, vector<1x8x8x8xf32>
    tpu.vector_store %arg8[%c0_82, %c1_83, %c1_84, %c0_85], %43 {strides = array<i32>} : memref<1x10x10x8xf32, #tpu.memory_space<vmem>>, vector<1x8x8x8xf32>,
    %c0_86 = arith.constant 0 : index
    %c0_87 = arith.constant 0 : index
    %c0_88 = arith.constant 0 : index
    %c0_89 = arith.constant 0 : index
    %45 = vector.load %arg8[%c0_86, %c0_87, %c0_88, %c0_89] : memref<1x10x10x8xf32, #tpu.memory_space<vmem>>, vector<1x8x8x8xf32>
    %c0_90 = arith.constant 0 : index
    %c0_91 = arith.constant 0 : index
    %c1_92 = arith.constant 1 : index
    %c0_93 = arith.constant 0 : index
    %46 = vector.load %arg8[%c0_90, %c0_91, %c1_92, %c0_93] : memref<1x10x10x8xf32, #tpu.memory_space<vmem>>, vector<1x8x8x8xf32>
    %c0_94 = arith.constant 0 : index
    %c0_95 = arith.constant 0 : index
    %c2_96 = arith.constant 2 : index
    %c0_97 = arith.constant 0 : index
    %47 = vector.load %arg8[%c0_94, %c0_95, %c2_96, %c0_97] : memref<1x10x10x8xf32, #tpu.memory_space<vmem>>, vector<1x8x8x8xf32>
    %c0_98 = arith.constant 0 : index
    %c1_99 = arith.constant 1 : index
    %c0_100 = arith.constant 0 : index
    %c0_101 = arith.constant 0 : index
    %48 = vector.load %arg8[%c0_98, %c1_99, %c0_100, %c0_101] : memref<1x10x10x8xf32, #tpu.memory_space<vmem>>, vector<1x8x8x8xf32>
    %c0_102 = arith.constant 0 : index
    %c1_103 = arith.constant 1 : index
    %c1_104 = arith.constant 1 : index
    %c0_105 = arith.constant 0 : index
    %49 = vector.load %arg8[%c0_102, %c1_103, %c1_104, %c0_105] : memref<1x10x10x8xf32, #tpu.memory_space<vmem>>, vector<1x8x8x8xf32>
    %c0_106 = arith.constant 0 : index
    %c1_107 = arith.constant 1 : index
    %c2_108 = arith.constant 2 : index
    %c0_109 = arith.constant 0 : index
    %50 = vector.load %arg8[%c0_106, %c1_107, %c2_108, %c0_109] : memref<1x10x10x8xf32, #tpu.memory_space<vmem>>, vector<1x8x8x8xf32>
    %c0_110 = arith.constant 0 : index
    %c2_111 = arith.constant 2 : index
    %c0_112 = arith.constant 0 : index
    %c0_113 = arith.constant 0 : index
    %51 = vector.load %arg8[%c0_110, %c2_111, %c0_112, %c0_113] : memref<1x10x10x8xf32, #tpu.memory_space<vmem>>, vector<1x8x8x8xf32>
    %c0_114 = arith.constant 0 : index
    %c2_115 = arith.constant 2 : index
    %c1_116 = arith.constant 1 : index
    %c0_117 = arith.constant 0 : index
    %52 = vector.load %arg8[%c0_114, %c2_115, %c1_116, %c0_117] : memref<1x10x10x8xf32, #tpu.memory_space<vmem>>, vector<1x8x8x8xf32>
    %c0_118 = arith.constant 0 : index
    %c2_119 = arith.constant 2 : index
    %c2_120 = arith.constant 2 : index
    %c0_121 = arith.constant 0 : index
    %53 = vector.load %arg8[%c0_118, %c2_119, %c2_120, %c0_121] : memref<1x10x10x8xf32, #tpu.memory_space<vmem>>, vector<1x8x8x8xf32>
    %54 = tpu.concatenate %45, %46, %47, %48, %49, %50, %51, %52, %53 in 3 : vector<1x8x8x8xf32>, vector<1x8x8x8xf32>, vector<1x8x8x8xf32>, vector<1x8x8x8xf32>, vector<1x8x8x8xf32>, vector<1x8x8x8xf32>, vector<1x8x8x8xf32>, vector<1x8x8x8xf32>, vector<1x8x8x8xf32> -> vector<1x8x8x72xf32>
    %55 = vector.shape_cast %54 : vector<1x8x8x72xf32> to vector<64x72xf32>
    %c0_122 = arith.constant 0 : index
    %c0_123 = arith.constant 0 : index
    %56 = vector.load %arg4[%c0_122, %c0_123] : memref<72x8xf32, #tpu.memory_space<vmem>>, vector<72x8xf32>
    %cst_124 = arith.constant dense<0.000000e+00> : vector<64x8xf32>
    %57 = tpu.matmul %55, %56, %cst_124 {dimension_numbers = #tpu.dot_dimension_numbers<[1], [0], [0], [1], [0, 0, 1, 1], [], []>} : vector<64x72xf32>, vector<72x8xf32>, vector<64x8xf32> -> vector<64x8xf32>
    %c0_125 = arith.constant 0 : index
    %c0_126 = arith.constant 0 : index
    %58 = vector.load %arg5[%c0_125, %c0_126] : memref<1x8xf32, #tpu.memory_space<vmem>>, vector<1x8xf32>
    %59 = vector.broadcast %58 : vector<1x8xf32> to vector<64x8xf32>
    %60 = arith.addf %57, %59 : vector<64x8xf32>
    %cst_127 = arith.constant 0.000000e+00 : f32
    %61 = vector.broadcast %cst_127 : f32 to vector<64x8xf32>
    %62 = arith.maximumf %60, %61 : vector<64x8xf32>
    %c0_128 = arith.constant 0 : index
    %c0_129 = arith.constant 0 : index
    %63 = vector.load %arg6[%c0_128, %c0_129] : memref<64x8xf32, #tpu.memory_space<vmem>>, vector<64x8xf32>
    tpu.vector_store %arg6[%c0_128, %c0_129], %62 {strides = array<i32>} : memref<64x8xf32, #tpu.memory_space<vmem>>, vector<64x8xf32>,
    return
  }
  func.func @transform_0(%arg0: i32) -> (i32, i32, i32, i32, i32) {
    %c0_i32 = arith.constant 0 : i32
    %c0_i32_0 = arith.constant 0 : i32
    %c0_i32_1 = arith.constant 0 : i32
    %c0_i32_2 = arith.constant 0 : i32
    %c0_i32_3 = arith.constant 0 : i32
    return %arg0, %c0_i32, %c0_i32_0, %c0_i32_1, %c0_i32_2 : i32, i32, i32, i32, i32
  }
  func.func @transform_1(%arg0: i32) -> (i32, i32) {
    %c0_i32 = arith.constant 0 : i32
    %c0_i32_0 = arith.constant 0 : i32
    %c0_i32_1 = arith.constant 0 : i32
    return %c0_i32, %c0_i32_0 : i32, i32
  }
  func.func @transform_2(%arg0: i32) -> (i32, i32) {
    %c0_i32 = arith.constant 0 : i32
    %c0_i32_0 = arith.constant 0 : i32
    %c0_i32_1 = arith.constant 0 : i32
    return %c0_i32, %c0_i32_0 : i32, i32
  }
  func.func @transform_3(%arg0: i32) -> (i32, i32) {
    %c0_i32 = arith.constant 0 : i32
    %c0_i32_0 = arith.constant 0 : i32
    %c0_i32_1 = arith.constant 0 : i32
    return %c0_i32, %c0_i32_0 : i32, i32
  }
  func.func @transform_4(%arg0: i32) -> (i32, i32) {
    %c0_i32 = arith.constant 0 : i32
    %c0_i32_0 = arith.constant 0 : i32
    %c0_i32_1 = arith.constant 0 : i32
    return %c0_i32, %c0_i32_0 : i32, i32
  }
  func.func @transform_5(%arg0: i32) -> (i32, i32) {
    %c0_i32 = arith.constant 0 : i32
    %c0_i32_0 = arith.constant 0 : i32
    return %arg0, %c0_i32 : i32, i32
  }
}

</mosaic_0001>

<bundles_post_ra>
// kernel: tpu_custom_call.1
= control target key start
LH: loop header
LB: loop body
LE: loop exit
PB: predicated region body
PF: predicated region fallthrough
CT: control target
= control target key end

     0   :  { %s1733_s18 = smov 0   ;;  %s2311_s0 = inlined_call_operand.vmem [shape: f32[2,4,8,8,4], index: 0, kind: input, shape index: {}]   ;;  %s2312_s1 = inlined_call_operand.vmem [shape: f32[36,8], index: 1, kind: input, shape index: {}]   ;;  %s2313_s2 = inlined_call_operand.vmem [shape: f32[1,8], index: 2, kind: input, shape index: {}]   ;;  %s2314_s3 = inlined_call_operand.vmem [shape: f32[72,8], index: 3, kind: input, shape index: {}]   ;;  %s2315_s4 = inlined_call_operand.vmem [shape: f32[1,8], index: 4, kind: input, shape index: {}]   ;;  %s2316_s5 = inlined_call_operand.vmem [shape: f32[128,8], index: 5, kind: output, shape index: {}]  }
   0x1 LB: > { %s1739_s19 = sadd.s32 4294967295, %s1688_s18   ;;  %p1528_p0 = scmp.ge.s32.totalorder %s1688_s18, 1  ;;  %s1688_s18 = sphi %s1733_s18, %s15_s18  }
   0x2   : > { %p187_p1 = scmp.lt.s32.totalorder %s1688_s18, 3 }
   0x4   : > { %p188_p2 = pnand %p1528_p0, %p187_p1 }
   0x5   : > { %vm226_vm0 = vcmask (!%p188_p2), 31744   ;;  %vm228_vm1 = vcmask (!%p188_p2), 25600   ;;  %vm233_vm2 = vcmask (!%p188_p2), 24576   ;;  %v1690_v0 = vmov (!%p188_p2), 0.0   ;;  %p215_p3 = scmp.lt.s32.totalorder (!%p188_p2), %s1739_s19, 1  ;;  %s1691_s25 = smov (!%p188_p2), 4  }
   0x6   : > { %191 = sbr.rel (%p188_p2) target bundleno = 885 (0x375), region = 40  ;;  %227 = vst.msk [vmem:[#allocation2] sm:$0xff] (!%p188_p2), %vm226_vm0, %v1690_v0  ;;  %231 = vst.msk [vmem:[#allocation2 + $0x90] sm:$0xff] (!%p188_p2), %vm226_vm0, %v1690_v0  ;;  %vm254_vm3 = vcmask (!%p188_p2), 64512   ;;  %s1692_s26 = smov (!%p188_p2), 8   ;;  %vm783_vm4 = vcmask (!%p188_p2), 1043456  }
   0x7   : > { %229 = vst.msk [vmem:[#allocation2 + $0x8] sm:$0x3] (!%p188_p2), %vm228_vm1, %v1690_v0  ;;  %232 = vst.msk [vmem:[#allocation2 + $0x98] sm:$0x3] (!%p188_p2), %vm228_vm1, %v1690_v0  ;;  %s1693_s27 = smov (!%p188_p2), 12   ;;  %s1694_s28 = smov (!%p188_p2), 16  }
   0x8   : > { %235 = vst.msk [vmem:[#allocation2 + $0x10] sm:$0x1] (!%p188_p2), %vm233_vm2, %v1690_v0  ;;  %236 = vst.msk [vmem:[#allocation2 + $0x20] sm:$0x1] (!%p188_p2), %vm233_vm2, %v1690_v0  ;;  %s1695_s29 = smov (!%p188_p2), 20   ;;  %s1696_s9 = smov (!%p188_p2), 24  }
   0x9   : > { %237 = vst.msk [vmem:[#allocation2 + $0x30] sm:$0x1] (!%p188_p2), %vm233_vm2, %v1690_v0  ;;  %238 = vst.msk [vmem:[#allocation2 + $0x40] sm:$0x1] (!%p188_p2), %vm233_vm2, %v1690_v0  ;;  %s1697_s16 = smov (!%p188_p2), 28   ;;  %s1698_s17 = smov (!%p188_p2), 32  }
   0xa   : > { %239 = vst.msk [vmem:[#allocation2 + $0x50] sm:$0x1] (!%p188_p2), %vm233_vm2, %v1690_v0  ;;  %240 = vst.msk [vmem:[#allocation2 + $0x60] sm:$0x1] (!%p188_p2), %vm233_vm2, %v1690_v0  ;;  %vm692_vm5 = vcmask (!%p188_p2), 97280   ;;  %vm701_vm6 = vcmask (!%p188_p2), 130048  }
   0xb   : > { %241 = vst.msk [vmem:[#allocation2 + $0x70] sm:$0x1] (!%p188_p2), %vm233_vm2, %v1690_v0  ;;  %242 = vst.msk [vmem:[#allocation2 + $0x80] sm:$0x1] (!%p188_p2), %vm233_vm2, %v1690_v0  ;;  %vm710_vm7 = vcmask (!%p188_p2), 162816   ;;  %vm719_vm8 = vcmask (!%p188_p2), 195584  }
   0xc   : > { %245 = vst.msk [vmem:[#allocation2 + $0x19] sm:$0x1] (!%p188_p2), %vm233_vm2, %v1690_v0  ;;  %246 = vst.msk [vmem:[#allocation2 + $0x29] sm:$0x1] (!%p188_p2), %vm233_vm2, %v1690_v0  ;;  %vm728_vm9 = vcmask (!%p188_p2), 228352   ;;  %vm737_vm10 = vcmask (!%p188_p2), 261120  }
   0xd   : > { %247 = vst.msk [vmem:[#allocation2 + $0x39] sm:$0x1] %vm233_vm2, %v1690_v0  ;;  %248 = vst.msk [vmem:[#allocation2 + $0x49] sm:$0x1] %vm233_vm2, %v1690_v0  ;;  %s216_s20 = scalar_select %p215_p3, %s1739_s19, 1  ;;  %vm758_vm11 = vcmask 293888  }
   0xe   : > { %249 = vst.msk [vmem:[#allocation2 + $0x59] sm:$0x1] %vm233_vm2, %v1690_v0  ;;  %250 = vst.msk [vmem:[#allocation2 + $0x69] sm:$0x1] %vm233_vm2, %v1690_v0  ;;  %v355_v4 = vld [vmem:[#allocation2 + $0x1] sm:$0xff]  ;;  %vm261_vm12 = vcmask 57344  }
   0xf   : > { %251 = vst.msk [vmem:[#allocation2 + $0x79] sm:$0x1] %vm233_vm2, %v1690_v0  ;;  %252 = vst.msk [vmem:[#allocation2 + $0x89] sm:$0x1] %vm233_vm2, %v1690_v0  ;;  %s1554_s21 = sshll.u32 %s216_s20, 8  ;;  %428 = vrot.lane.b32.xlu0 %v355_v4, %s1691_s25  ;;  %v747_v4 = vld [vmem:[%s2312_s1 + $0x8] sm:$0xff] }
  0x10   : > { %244 = vst.msk [vmem:[#allocation2 + $0x9] sm:$0x1] %vm233_vm2, %v1690_v0  ;;  %234 = vst.msk [vmem:[#allocation2] sm:$0x1] %vm233_vm2, %v1690_v0  ;;  %s1798_s24 = scalar_lea.vmem %s2311_s0, %s1554_s21  ;;  %vm256_vm13 = vcmask 58368   ;;  %s1699_s20 = smov 48  }
  0x11   : > { %243 = vst.msk [vmem:[#allocation2 + $0x90] sm:$0x1] %vm233_vm2, %v1690_v0  ;;  %253 = vst.msk [vmem:[#allocation2 + $0x99] sm:$0x1] %vm233_vm2, %v1690_v0  ;;  %v282_v1 = vld [vmem:[%s1798_s24] sm:$0xff]  ;;  %v283_v7 = vld [vmem:[%s1798_s24 + $0x8] sm:$0xff] }
  0x12   : > { %255 = vst.msk [vmem:[#allocation3] sm:$0xff] %vm254_vm3, %v1690_v0  ;;  %259 = vst.msk [vmem:[#allocation3 + $0x90] sm:$0xff] %vm254_vm3, %v1690_v0  ;;  %v290_v2 = vld [vmem:[%s1798_s24 + $0x40] sm:$0xff]  ;;  %v291_v10 = vld [vmem:[%s1798_s24 + $0x48] sm:$0xff]  ;;  %s1700_s21 = smov 56   ;;  %vm1270_vm14 = vcmask 326656  }
  0x13   : > { %v298_v3 = vld [vmem:[%s1798_s24 + $0x80] sm:$0xff]  ;;  %v314_v6 = vmax.f32 %v282_v1, %v290_v2  ;;  %v299_v11 = vld [vmem:[%s1798_s24 + $0x88] sm:$0xff]  ;;  %v315_v13 = vmax.f32 %v283_v7, %v291_v10  ;;  %v284_v14 = vld [vmem:[%s1798_s24 + $0x10] sm:$0xff]  ;;  %271 = vst.msk [vmem:[#allocation3 + $0x90] sm:$0x1] %vm261_vm12, %v1690_v0  ;;  %vm1279_vm15 = vcmask 392192  }
  0x14   : > { %v306_v5 = vld [vmem:[%s1798_s24 + $0xc0] sm:$0xff]  ;;  %v307_v12 = vld [vmem:[%s1798_s24 + $0xc8] sm:$0xff]  ;;  %v292_v15 = vld [vmem:[%s1798_s24 + $0x50] sm:$0xff]  ;;  %262 = vst.msk [vmem:[#allocation3] sm:$0x1] %vm261_vm12, %v1690_v0  ;;  %vm1297_vm1 = vcmask 523264  }
  0x15   : > { %v322_v9 = vmax.f32 %v298_v3, %v306_v5  ;;  %v323_v17 = vmax.f32 %v299_v11, %v307_v12  ;;  %v300_v18 = vld [vmem:[%s1798_s24 + $0x90] sm:$0xff]  ;;  %v316_v20 = vmax.f32 %v284_v14, %v292_v15  ;;  %v285_v21 = vld [vmem:[%s1798_s24 + $0x18] sm:$0xff]  ;;  %v286_v29 = vld [vmem:[%s1798_s24 + $0x20] sm:$0xff]  ;;  %263 = vst.msk [vmem:[#allocation3 + $0x10] sm:$0x1] %vm261_vm12, %v1690_v0  ;;  %vm1322_vm2 = vcmask 588800  }
  0x16   : > { %v308_v19 = vld [vmem:[%s1798_s24 + $0xd0] sm:$0xff]  ;;  %v293_v23 = vld [vmem:[%s1798_s24 + $0x58] sm:$0xff]  ;;  %v294_v30 = vld [vmem:[%s1798_s24 + $0x60] sm:$0xff]  ;;  %264 = vst.msk [vmem:[#allocation3 + $0x20] sm:$0x1] %vm261_vm12, %v1690_v0 }
  0x17   : > { %v363_v8 = vld [vmem:[#allocation2 + $0x2] sm:$0xff]  ;;  %v330_v16 = vmax.f32 %v314_v6, %v322_v9  ;;  %v324_v22 = vmax.f32 %v300_v18, %v308_v19  ;;  %v301_v24 = vld [vmem:[%s1798_s24 + $0x98] sm:$0xff]  ;;  %v331_v26 = vmax.f32 %v315_v13, %v323_v17  ;;  %v317_v27 = vmax.f32 %v285_v21, %v293_v23  ;;  %v288_v42 = vld [vmem:[%s1798_s24 + $0x30] sm:$0xff]  ;;  %265 = vst.msk [vmem:[#allocation3 + $0x30] sm:$0x1] %vm261_vm12, %v1690_v0 }
  0x18   : > { %460 = vrot.lane.b32.xlu1 %v363_v8, %s1692_s26  ;;  %v309_v25 = vld [vmem:[%s1798_s24 + $0xd8] sm:$0xff]  ;;  %v302_v31 = vld [vmem:[%s1798_s24 + $0xa0] sm:$0xff]  ;;  %v318_v34 = vmax.f32 %v286_v29, %v294_v30  ;;  %v287_v35 = vld [vmem:[%s1798_s24 + $0x28] sm:$0xff]  ;;  %266 = vst.msk [vmem:[#allocation3 + $0x40] sm:$0x1] %vm261_vm12, %v1690_v0 }
  0x19   : > { %339 = vst.msk [vmem:[#allocation2 + $0x11] sm:$0xff] %vm226_vm0, %v330_v16  ;;  %v325_v28 = vmax.f32 %v301_v24, %v309_v25  ;;  %v332_v32 = vmax.f32 %v316_v20, %v324_v22  ;;  %v310_v33 = vld [vmem:[%s1798_s24 + $0xe0] sm:$0xff]  ;;  %v295_v36 = vld [vmem:[%s1798_s24 + $0x68] sm:$0xff]  ;;  %340 = vst.msk [vmem:[#allocation2 + $0x21] sm:$0xff] %vm226_vm0, %v331_v26 }
  0x1a   : > { %v326_v38 = vmax.f32 %v302_v31, %v310_v33  ;;  %v303_v39 = vld [vmem:[%s1798_s24 + $0xa8] sm:$0xff]  ;;  %v319_v41 = vmax.f32 %v287_v35, %v295_v36  ;;  %v296_v44 = vld [vmem:[%s1798_s24 + $0x70] sm:$0xff]  ;;  %v289_v50 = vld [vmem:[%s1798_s24 + $0x38] sm:$0xff]  ;;  %267 = vst.msk [vmem:[#allocation3 + $0x50] sm:$0x1] %vm261_vm12, %v1690_v0 }
  0x1b   : > { %v333_v37 = vmax.f32 %v317_v27, %v325_v28  ;;  %v311_v40 = vld [vmem:[%s1798_s24 + $0xe8] sm:$0xff]  ;;  %341 = vst.msk [vmem:[#allocation2 + $0x31] sm:$0xff] %vm226_vm0, %v332_v32  ;;  %v304_v45 = vld [vmem:[%s1798_s24 + $0xb0] sm:$0xff]  ;;  %v320_v48 = vmax.f32 %v288_v42, %v296_v44  ;;  %v297_v51 = vld [vmem:[%s1798_s24 + $0x78] sm:$0xff] }
  0x1c   : > { %v327_v43 = vmax.f32 %v303_v39, %v311_v40  ;;  %v312_v46 = vld [vmem:[%s1798_s24 + $0xf0] sm:$0xff]  ;;  %v334_v47 = vmax.f32 %v318_v34, %v326_v38  ;;  %v305_v52 = vld [vmem:[%s1798_s24 + $0xb8] sm:$0xff]  ;;  %v321_v55 = vmax.f32 %v289_v50, %v297_v51  ;;  %v746_v3 = vld [vmem:[%s2312_s1] sm:$0xff]  ;;  %268 = vst.msk [vmem:[#allocation3 + $0x60] sm:$0x1] %vm261_vm12, %v1690_v0 }
  0x1d   : > { %342 = vst.msk [vmem:[#allocation2 + $0x41] sm:$0xff] %vm226_vm0, %v333_v37  ;;  %v328_v49 = vmax.f32 %v304_v45, %v312_v46  ;;  %v313_v54 = vld [vmem:[%s1798_s24 + $0xf8] sm:$0xff]  ;;  %v1637_v5 = vpack.c.bf16 %v747_v4, %v746_v3  ;;  %v748_v8 = vld [vmem:[%s2312_s1 + $0x10] sm:$0xff]  ;;  %v750_v11 = vld [vmem:[%s2312_s1 + $0x20] sm:$0xf]  ;;  %s1701_s24 = smov 40  }
  0x1e   : > { %v335_v53 = vmax.f32 %v319_v41, %v327_v43  ;;  %343 = vst.msk [vmem:[#allocation2 + $0x51] sm:$0xff] %vm226_vm0, %v334_v47  ;;  %v329_v57 = vmax.f32 %v305_v52, %v313_v54  ;;  %v749_v9 = vld [vmem:[%s2312_s1 + $0x18] sm:$0xff]  ;;  %v403_v29 = vld [vmem:[#allocation2 + $0x90] sm:$0xff]  ;;  %v347_v46 = vld [vmem:[#allocation2] sm:$0xff] }
  0x1f   : > { %v336_v56 = vmax.f32 %v320_v48, %v328_v49  ;;  %1638 = vmatprep.subr.bf16.mxu0 %v1637_v5  ;;  %v1641_v10 = vpack.c.bf16 %v749_v9, %v748_v8  ;;  %v411_v30 = vld [vmem:[#allocation2 + $0x91] sm:$0xff]  ;;  %269 = vst.msk [vmem:[#allocation3 + $0x70] sm:$0x1] %vm261_vm12, %v1690_v0  ;;  %270 = vst.msk [vmem:[#allocation3 + $0x80] sm:$0x1] %vm261_vm12, %v1690_v0 }
  0x20   : > { %v364_v58 = vld [vmem:[#allocation2 + $0x12] sm:$0xff]  ;;  %344 = vst.msk [vmem:[#allocation2 + $0x61] sm:$0xff] %vm226_vm0, %v335_v53  ;;  %v337_v60 = vmax.f32 %v321_v55, %v329_v57  ;;  %v1843_v61 = vld [vmem:[#allocation2 + $0x20] sm:$0xff]  ;;  %1640 = vmatpush3.bf16.msra.mxu0 %v1637_v5 }
  0x21   : > { %v356_v59 = vld [vmem:[#allocation2 + $0x11] sm:$0xff]  ;;  %462 = vrot.lane.b32.xlu1 %v364_v58, %s1692_s26  ;;  %345 = vst.msk [vmem:[#allocation2 + $0x71] sm:$0xff] %vm226_vm0, %v336_v56  ;;  %v357_v63 = vld [vmem:[#allocation2 + $0x21] sm:$0xff]  ;;  %1642 = vmatprep.subr.bf16.mxu0 %v1641_v10 }
  0x22   : > { %430 = vrot.lane.b32.xlu0 %v356_v59, %s1691_s25  ;;  %v1845_v62 = vld [vmem:[#allocation2 + $0x10] sm:$0xff]  ;;  %346 = vst.msk [vmem:[#allocation2 + $0x81] sm:$0xff] %vm226_vm0, %v337_v60  ;;  %v365_v1 = vld [vmem:[#allocation2 + $0x22] sm:$0xff] }
  0x23   : > { %v358_v2 = vld [vmem:[#allocation2 + $0x31] sm:$0xff]  ;;  %273 = vst.msk [vmem:[#allocation3 + $0x19] sm:$0x1] %vm261_vm12, %v1690_v0  ;;  %274 = vst.msk [vmem:[#allocation3 + $0x29] sm:$0x1] %vm261_vm12, %v1690_v0 }
  0x24   : > { %v1867_v6 = vld [vmem:[#allocation2 + $0x30] sm:$0xff]  ;;  %1644 = vmatpush3.bf16.msra.mxu0 %v1641_v10  ;;  %v1884_v12 = vld [vmem:[#allocation2 + $0x40] sm:$0xff]  ;;  %275 = vst.msk [vmem:[#allocation3 + $0x39] sm:$0x1] %vm261_vm12, %v1690_v0  ;;  %276 = vst.msk [vmem:[#allocation3 + $0x49] sm:$0x1] %vm261_vm12, %v1690_v0 }
  0x25   : > { %494 = vrot.lane.b32.xlu1 %v1843_v61, %s1693_s27  ;;  %v366_v7 = vld [vmem:[#allocation2 + $0x32] sm:$0xff]  ;;  %1593 = vmatprep.subr.msk.mxu0 %vm783_vm4, %v750_v11  ;;  %v382_v13 = vld [vmem:[#allocation2 + $0x41] sm:$0xff]  ;;  %277 = vst.msk [vmem:[#allocation3 + $0x59] sm:$0x1] %vm261_vm12, %v1690_v0  ;;  %278 = vst.msk [vmem:[#allocation3 + $0x69] sm:$0x1] %vm261_vm12, %v1690_v0 }
  0x26   : > { %492 = vrot.lane.b32.xlu0 %v1845_v62, %s1693_s27  ;;  %v367_v14 = vld [vmem:[#allocation2 + $0x42] sm:$0xff]  ;;  %v360_v15 = vld [vmem:[#allocation2 + $0x51] sm:$0xff]  ;;  %279 = vst.msk [vmem:[#allocation3 + $0x79] sm:$0x1] %vm261_vm12, %v1690_v0  ;;  %280 = vst.msk [vmem:[#allocation3 + $0x89] sm:$0x1] %vm261_vm12, %v1690_v0 }
  0x27   : > { %v1900_v16 = vld [vmem:[#allocation2 + $0x50] sm:$0xff]  ;;  %v1908_v18 = vld [vmem:[#allocation2 + $0x60] sm:$0xff]  ;;  %257 = vst.msk [vmem:[#allocation3 + $0x8] sm:$0x3] %vm256_vm13, %v1690_v0  ;;  %260 = vst.msk [vmem:[#allocation3 + $0x98] sm:$0x3] %vm256_vm13, %v1690_v0 }
  0x28   : > { %1594 = vmatpush3.msk.msra.mxu0 %vm783_vm4, %v750_v11  ;;  %v368_v17 = vld [vmem:[#allocation2 + $0x52] sm:$0xff]  ;;  %v384_v19 = vld [vmem:[#allocation2 + $0x61] sm:$0xff]  ;;  %272 = vst.msk [vmem:[#allocation3 + $0x9] sm:$0x1] %vm261_vm12, %v1690_v0  ;;  %281 = vst.msk [vmem:[#allocation3 + $0x99] sm:$0x1] %vm261_vm12, %v1690_v0 }
  0x29   : > { %432 = vrot.lane.b32.xlu1 %v357_v63, %s1691_s25  ;;  %v369_v20 = vld [vmem:[#allocation2 + $0x62] sm:$0xff]  ;;  %v362_v21 = vld [vmem:[#allocation2 + $0x71] sm:$0xff] }
  0x2a   : > { %524 = vrot.lane.b32.xlu0 %v356_v59, %s1694_s28  ;;  %v1924_v22 = vld [vmem:[#allocation2 + $0x70] sm:$0xff]  ;;  %v378_v24 = vld [vmem:[#allocation2 + $0x80] sm:$0xff] }
  0x2b   : > { %v370_v23 = vld [vmem:[#allocation2 + $0x72] sm:$0xff]  ;;  %v386_v25 = vld [vmem:[#allocation2 + $0x81] sm:$0xff] }
  0x2c   : > { %v394_v26 = vld [vmem:[#allocation2 + $0x82] sm:$0xff]  ;;  %v419_v33 = vld [vmem:[#allocation2 + $0x92] sm:$0xff] }
  0x2d   : > { %556 = vrot.lane.b32.xlu1 %v364_v58, %s1695_s29 }
  0x2e   : > { %526 = vrot.lane.b32.xlu0 %v357_v63, %s1694_s28 }
  0x31   : > { %464 = vrot.lane.b32.xlu1 %v365_v1, %s1692_s26 }
  0x32   : > { %434 = vrot.lane.b32.xlu0 %v358_v2, %s1691_s25 }
  0x35   : > { %588 = vrot.lane.b32.xlu1 %v1843_v61, %s1696_s9 }
  0x36   : > { %558 = vrot.lane.b32.xlu0 %v365_v1, %s1695_s29 }
  0x39   : > { %496 = vrot.lane.b32.xlu1 %v1867_v6, %s1693_s27 }
  0x3a   : > { %466 = vrot.lane.b32.xlu0 %v366_v7, %s1692_s26 }
  0x3d   : > { %620 = vrot.lane.b32.xlu1 %v357_v63, %s1697_s16 }
  0x3e   : > { %590 = vrot.lane.b32.xlu0 %v1867_v6, %s1696_s9 }
  0x41   : > { %528 = vrot.lane.b32.xlu1 %v358_v2, %s1694_s28 }
  0x42   : > { %498 = vrot.lane.b32.xlu0 %v1884_v12, %s1693_s27 }
  0x45   : > { %652 = vrot.lane.b32.xlu1 %v365_v1, %s1698_s17 }
  0x46   : > { %622 = vrot.lane.b32.xlu0 %v358_v2, %s1697_s16 }
  0x49   : > { %530 = vrot.lane.b32.xlu1 %v382_v13, %s1694_s28 }
  0x4a   : > { %436 = vrot.lane.b32.xlu0 %v382_v13, %s1691_s25 }
  0x4d   : > { %654 = vrot.lane.b32.xlu1 %v366_v7, %s1698_s17 }
  0x4e   : > { %560 = vrot.lane.b32.xlu0 %v366_v7, %s1695_s29 }
  0x51   : > { %468 = vrot.lane.b32.xlu1 %v367_v14, %s1692_s26 }
  0x52   : > { %438 = vrot.lane.b32.xlu0 %v360_v15, %s1691_s25 }
  0x55   : > { %592 = vrot.lane.b32.xlu1 %v1884_v12, %s1696_s9 }
  0x56   : > { %562 = vrot.lane.b32.xlu0 %v367_v14, %s1695_s29 }
  0x59   : > { %500 = vrot.lane.b32.xlu1 %v1900_v16, %s1693_s27 }
  0x5a   : > { %470 = vrot.lane.b32.xlu0 %v368_v17, %s1692_s26 }
  0x5d   : > { %624 = vrot.lane.b32.xlu1 %v382_v13, %s1697_s16 }
  0x5e   : > { %594 = vrot.lane.b32.xlu0 %v1900_v16, %s1696_s9 }
  0x61   : > { %532 = vrot.lane.b32.xlu1 %v360_v15, %s1694_s28 }
  0x62   : > { %502 = vrot.lane.b32.xlu0 %v1908_v18, %s1693_s27 }
  0x65   : > { %656 = vrot.lane.b32.xlu1 %v367_v14, %s1698_s17 }
  0x66   : > { %626 = vrot.lane.b32.xlu0 %v360_v15, %s1697_s16 }
  0x69   : > { %534 = vrot.lane.b32.xlu1 %v384_v19, %s1694_s28 }
  0x6a   : > { %440 = vrot.lane.b32.xlu0 %v384_v19, %s1691_s25 }
  0x6d   : > { %658 = vrot.lane.b32.xlu1 %v368_v17, %s1698_s17 }
  0x6e   : > { %564 = vrot.lane.b32.xlu0 %v368_v17, %s1695_s29 }
  0x71   : > { %472 = vrot.lane.b32.xlu1 %v369_v20, %s1692_s26 }
  0x72   : > { %442 = vrot.lane.b32.xlu0 %v362_v21, %s1691_s25  ;;  %s1702_s25 = smov 64  }
  0x75   : > { %596 = vrot.lane.b32.xlu1 %v1908_v18, %s1696_s9 }
  0x76   : > { %566 = vrot.lane.b32.xlu0 %v369_v20, %s1695_s29 }
  0x79   : > { %504 = vrot.lane.b32.xlu1 %v1924_v22, %s1693_s27 }
  0x7a   : > { %474 = vrot.lane.b32.xlu0 %v370_v23, %s1692_s26 }
  0x7d   : > { %628 = vrot.lane.b32.xlu1 %v384_v19, %s1697_s16 }
  0x7e   : > { %598 = vrot.lane.b32.xlu0 %v1924_v22, %s1696_s9 }
  0x81   : > { %536 = vrot.lane.b32.xlu1 %v362_v21, %s1694_s28  ;;  %v429_v27 = vpop.permute.xlu0 %428 }
  0x82   : > { %506 = vrot.lane.b32.xlu0 %v378_v24, %s1693_s27  ;;  %v676_v47 = vsel %vm226_vm0, %v347_v46, %v429_v27 }
  0x85   : > { %660 = vrot.lane.b32.xlu1 %v369_v20, %s1698_s17 }
  0x86   : > { %630 = vrot.lane.b32.xlu0 %v362_v21, %s1697_s16 }
  0x89   : > { %568 = vrot.lane.b32.xlu1 %v370_v23, %s1695_s29 }
  0x8a   : > { %538 = vrot.lane.b32.xlu0 %v386_v25, %s1694_s28  ;;  %v461_v28 = vpop.permute.xlu1 %460 }
  0x8b   : > { %v684_v50 = vsel %vm254_vm3, %v676_v47, %v461_v28 }
  0x8d   : > { %570 = vrot.lane.b32.xlu1 %v394_v26, %s1695_s29 }
  0x8e   : > { %662 = vrot.lane.b32.xlu0 %v370_v23, %s1698_s17 }
  0x91   : > { %602 = vrot.lane.b32.xlu1 %v403_v29, %s1696_s9 }
  0x92   : > { %600 = vrot.lane.b32.xlu0 %v378_v24, %s1696_s9 }
  0x93   : > { %v463_v31 = vpop.permute.xlu1 %462 }
  0x94   : > { %v431_v32 = vpop.permute.xlu0 %430 }
  0x95   : > { %634 = vrot.lane.b32.xlu1 %v411_v30, %s1697_s16  ;;  %v677_v57 = vsel %vm226_vm0, %v1845_v62, %v431_v32 }
  0x96   : > { %632 = vrot.lane.b32.xlu0 %v386_v25, %s1697_s16  ;;  %v685_v1 = vsel %vm254_vm3, %v677_v57, %v463_v31 }
  0x97   : > { %v495_v34 = vpop.permute.xlu1 %494 }
  0x98   : > { %v493_v35 = vpop.permute.xlu0 %492  ;;  %v694_v2 = vsel %vm692_vm5, %v685_v1, %v495_v34 }
  0x99   : > { %666 = vrot.lane.b32.xlu1 %v419_v33, %s1698_s17  ;;  %v693_v51 = vsel %vm692_vm5, %v684_v50, %v493_v35 }
  0x9a   : > { %664 = vrot.lane.b32.xlu0 %v394_v26, %s1698_s17 }
  0x9b   : > { %v433_v36 = vpop.permute.xlu1 %432 }
  0x9c   : > { %v525_v37 = vpop.permute.xlu0 %524  ;;  %v678_v24 = vsel %vm226_vm0, %v1843_v61, %v433_v36 }
  0x9d   : > { %v702_v54 = vsel %vm701_vm6, %v693_v51, %v525_v37 }
  0x9f   : > { %v557_v38 = vpop.permute.xlu1 %556 }
  0xa0   : > { %v527_v39 = vpop.permute.xlu0 %526  ;;  %v711_v55 = vsel %vm710_vm7, %v702_v54, %v557_v38 }
  0xa1   : > { %v703_v5 = vsel %vm701_vm6, %v694_v2, %v527_v39 }
  0xa3   : > { %v465_v40 = vpop.permute.xlu1 %464 }
  0xa4   : > { %v435_v41 = vpop.permute.xlu0 %434  ;;  %v686_v25 = vsel %vm254_vm3, %v678_v24, %v465_v40 }
  0xa5   : > { %v679_v61 = vsel %vm226_vm0, %v1867_v6, %v435_v41 }
  0xa7   : > { %v589_v42 = vpop.permute.xlu1 %588 }
  0xa8   : > { %v559_v43 = vpop.permute.xlu0 %558  ;;  %v720_v56 = vsel %vm719_vm8, %v711_v55, %v589_v42 }
  0xa9   : > { %v712_v7 = vsel %vm710_vm7, %v703_v5, %v559_v43 }
  0xab   : > { %v497_v44 = vpop.permute.xlu1 %496 }
  0xac   : > { %v467_v45 = vpop.permute.xlu0 %466  ;;  %v695_v26 = vsel %vm692_vm5, %v686_v25, %v497_v44 }
  0xad   : > { %v687_v36 = vsel %vm254_vm3, %v679_v61, %v467_v45 }
  0xaf   : > { %v621_v48 = vpop.permute.xlu1 %620 }
  0xb0   : > { %v591_v49 = vpop.permute.xlu0 %590  ;;  %v729_v58 = vsel %vm728_vm9, %v720_v56, %v621_v48 }
  0xb1   : > { %v721_v62 = vsel %vm719_vm8, %v712_v7, %v591_v49 }
  0xb3   : > { %v529_v52 = vpop.permute.xlu1 %528 }
  0xb4   : > { %v499_v53 = vpop.permute.xlu0 %498  ;;  %v704_v29 = vsel %vm701_vm6, %v695_v26, %v529_v52 }
  0xb5   : > { %v696_v37 = vsel %vm692_vm5, %v687_v36, %v499_v53 }
  0xb7   : > { %v653_v59 = vpop.permute.xlu1 %652 }
  0xb8   : > { %v623_v60 = vpop.permute.xlu0 %622  ;;  %v738_v63 = vsel %vm737_vm10, %v729_v58, %v653_v59 }
  0xb9   : > { %1595 = vmatprep.mubr.msk.f32.mxu0 %vm758_vm11, %v738_v63  ;;  %v730_v8 = vsel %vm728_vm9, %v721_v62, %v623_v60 }
  0xbb   : > { %v531_v3 = vpop.permute.xlu1 %530 }
  0xbc   : > { %v437_v4 = vpop.permute.xlu0 %436  ;;  %v705_v40 = vsel %vm701_vm6, %v696_v37, %v531_v3 }
  0xbd   : > { %v680_v54 = vsel %vm226_vm0, %v1884_v12, %v437_v4 }
  0xbf   : > { %v655_v9 = vpop.permute.xlu1 %654 }
  0xc0   : > { %v561_v10 = vpop.permute.xlu0 %560  ;;  %v739_v11 = vsel %vm737_vm10, %v730_v8, %v655_v9 }
  0xc1   : > { %1596 = vmatmul.mubr.msk.f32.vlgmr.msra.gmra.mrb[0].mxu0 %vm758_vm11, %v739_v11  ;;  %v713_v30 = vsel %vm710_vm7, %v704_v29, %v561_v10 }
  0xc3   : > { %v469_v13 = vpop.permute.xlu1 %468 }
  0xc4   : > { %v439_v14 = vpop.permute.xlu0 %438  ;;  %v688_v55 = vsel %vm254_vm3, %v680_v54, %v469_v13 }
  0xc5   : > { %v681_v12 = vsel %vm226_vm0, %v1900_v16, %v439_v14 }
  0xc7   : > { %v593_v15 = vpop.permute.xlu1 %592 }
  0xc8   : > { %v563_v17 = vpop.permute.xlu0 %562  ;;  %v722_v31 = vsel %vm719_vm8, %v713_v30, %v593_v15 }
  0xc9   : > { %v714_v42 = vsel %vm710_vm7, %v705_v40, %v563_v17  ;;  %v973_v40 = vld [vmem:[#allocation3 + $0x91] sm:$0xff] }
  0xcb   : > { %v501_v19 = vpop.permute.xlu1 %500 }
  0xcc   : > { %v471_v20 = vpop.permute.xlu0 %470  ;;  %v697_v56 = vsel %vm692_vm5, %v688_v55, %v501_v19 }
  0xcd   : > { %v689_v4 = vsel %vm254_vm3, %v681_v12, %v471_v20 }
  0xcf   : > { %v625_v21 = vpop.permute.xlu1 %624 }
  0xd0   : > { %v595_v23 = vpop.permute.xlu0 %594  ;;  %v731_v32 = vsel %vm728_vm9, %v722_v31, %v625_v21 }
  0xd1   : > { %v723_v43 = vsel %vm719_vm8, %v714_v42, %v595_v23  ;;  %v925_v42 = vld [vmem:[#allocation3 + $0x2] sm:$0xff] }
  0xd3   : > { %v533_v27 = vpop.permute.xlu1 %532 }
  0xd4   : > { %v503_v28 = vpop.permute.xlu0 %502  ;;  %v706_v59 = vsel %vm701_vm6, %v697_v56, %v533_v27 }
  0xd5   : > { %v698_v7 = vsel %vm692_vm5, %v689_v4, %v503_v28 }
  0xd7   : > { %v657_v33 = vpop.permute.xlu1 %656 }
  0xd8   : > { %v627_v34 = vpop.permute.xlu0 %626  ;;  %v740_v35 = vsel %vm737_vm10, %v731_v32, %v657_v33 }
  0xd9   : > { %1598 = vmatprep.mubr.msk.f32.mxu0 %vm758_vm11, %v740_v35  ;;  %v732_v44 = vsel %vm728_vm9, %v723_v43, %v627_v34  ;;  %v2076_v43 = vld [vmem:[%s2313_s2] ss:$0 sm:$0xff] }
  0xdb   : > { %v535_v38 = vpop.permute.xlu1 %534 }
  0xdc   : > { %v441_v39 = vpop.permute.xlu0 %440  ;;  %v707_v9 = vsel %vm701_vm6, %v698_v7, %v535_v38  ;;  %v965_v38 = vld [vmem:[#allocation3 + $0x90] sm:$0xff]  ;;  %v1310_v7 = vld [vmem:[%s2314_s3 + $0x20] sm:$0xff] }
  0xdd   : > { %v682_v20 = vsel %vm226_vm0, %v1908_v18, %v441_v39  ;;  %v917_v39 = vld [vmem:[#allocation3 + $0x1] sm:$0xff]  ;;  %1164 = vrot.lane.b32.xlu1 %v965_v38, %s1699_s20 }
  0xde   : > { %990 = vrot.lane.b32.xlu0 %v917_v39, %s1692_s26 }
  0xdf   : > { %v659_v46 = vpop.permute.xlu1 %658 }
  0xe0   : > { %v565_v47 = vpop.permute.xlu0 %564  ;;  %v741_v6 = vsel %vm737_vm10, %v732_v44, %v659_v46 }
  0xe1   : > { %1599 = vmatmul.mubr.msk.f32.gmra.mrb[2].mxu0 %vm758_vm11, %v741_v6  ;;  %v715_v60 = vsel %vm710_vm7, %v706_v59, %v565_v47  ;;  %1196 = vrot.lane.b32.xlu1 %v973_v40, %s1700_s21 }
  0xe2   : > { %1022 = vrot.lane.b32.xlu0 %v925_v42, %s1694_s28 }
  0xe3   : > { %v473_v41 = vpop.permute.xlu1 %472 }
  0xe4   : > { %v443_v45 = vpop.permute.xlu0 %442  ;;  %v690_v23 = vsel %vm254_vm3, %v682_v20, %v473_v41 }
  0xe5   : > { %v683_v21 = vsel %vm226_vm0, %v1924_v22, %v443_v45  ;;  %vm1288_vm0 = vcmask 457728  }
  0xe7   : > { %v597_v48 = vpop.permute.xlu1 %596 }
  0xe8   : > { %v567_v49 = vpop.permute.xlu0 %566  ;;  %v724_v63 = vsel %vm719_vm8, %v715_v60, %v597_v48  ;;  %v1306_v60 = vld [vmem:[%s2314_s3] sm:$0xff] }
  0xe9   : > { %v716_v10 = vsel %vm710_vm7, %v707_v9, %v567_v49 }
  0xeb   : > { %v505_v50 = vpop.permute.xlu1 %504 }
  0xec   : > { %v475_v51 = vpop.permute.xlu0 %474  ;;  %v699_v25 = vsel %vm692_vm5, %v690_v23, %v505_v50 }
  0xed   : > { %v691_v24 = vsel %vm254_vm3, %v683_v21, %v475_v51 }
  0xef   : > { %v629_v52 = vpop.permute.xlu1 %628 }
  0xf0   : > { %v599_v53 = vpop.permute.xlu0 %598  ;;  %v733_v1 = vsel %vm728_vm9, %v724_v63, %v629_v52  ;;  %v1307_v63 = vld [vmem:[%s2314_s3 + $0x8] sm:$0xff] }
  0xf1   : > { %v725_v11 = vsel %vm719_vm8, %v716_v10, %v599_v53  ;;  %v1312_v10 = vld [vmem:[%s2314_s3 + $0x30] sm:$0xff] }
  0xf3   : > { %v537_v57 = vpop.permute.xlu1 %536 }
  0xf4   : > { %v507_v58 = vpop.permute.xlu0 %506  ;;  %v708_v29 = vsel %vm701_vm6, %v699_v25, %v537_v57 }
  0xf5   : > { %v700_v26 = vsel %vm692_vm5, %v691_v24, %v507_v58 }
  0xf7   : > { %v661_v2 = vpop.permute.xlu1 %660 }
  0xf8   : > { %v631_v3 = vpop.permute.xlu0 %630  ;;  %v742_v5 = vsel %vm737_vm10, %v733_v1, %v661_v2  ;;  %v1645_v1 = vpack.c.bf16 %v1307_v63, %v1306_v60 }
  0xf9   : > { %1601 = vmatprep.mubr.msk.f32.mxu0 %vm758_vm11, %v742_v5  ;;  %v734_v13 = vsel %vm728_vm9, %v725_v11, %v631_v3  ;;  %v1308_v3 = vld [vmem:[%s2314_s3 + $0x10] sm:$0xff]  ;;  %v1309_v5 = vld [vmem:[%s2314_s3 + $0x18] sm:$0xff] }
  0xfa   : > { %v1649_v12 = vpack.c.bf16 %v1309_v5, %v1308_v3  ;;  %1646 = vmatprep.subr.bf16.mxu1 %v1645_v1  ;;  %v1313_v11 = vld [vmem:[%s2314_s3 + $0x38] sm:$0xff] }
  0xfb   : > { %v569_v62 = vpop.permute.xlu1 %568  ;;  %1648 = vmatpush3.bf16.msra.mxu1 %v1645_v1 }
  0xfc   : > { %v539_v8 = vpop.permute.xlu0 %538  ;;  %v717_v31 = vsel %vm710_vm7, %v708_v29, %v569_v62  ;;  %1650 = vmatprep.subr.bf16.mxu1 %v1649_v12  ;;  %v1311_v62 = vld [vmem:[%s2314_s3 + $0x28] sm:$0xff] }
  0xfd   : > { %v709_v30 = vsel %vm701_vm6, %v700_v26, %v539_v8  ;;  %v1653_v8 = vpack.c.bf16 %v1311_v62, %v1310_v7 }
  0xff   : > { %v571_v15 = vpop.permute.xlu1 %570  ;;  %1652 = vmatpush3.bf16.msra.mxu1 %v1649_v12 }
 0x100   : > { %v663_v17 = vpop.permute.xlu0 %662  ;;  %v718_v18 = vsel %vm710_vm7, %v709_v30, %v571_v15  ;;  %1654 = vmatprep.subr.bf16.mxu1 %v1653_v8 }
 0x101   : > { %v743_v16 = vsel %vm737_vm10, %v734_v13, %v663_v17  ;;  %v1657_v13 = vpack.c.bf16 %v1313_v11, %v1312_v10  ;;  %v1314_v17 = vld [vmem:[%s2314_s3 + $0x40] sm:$0xff] }
 0x102   : > { %1602 = vmatmul.mubr.msk.f32.gmra.mrb[4].mxu0 %vm758_vm11, %v743_v16 }
 0x103   : > { %v603_v14 = vpop.permute.xlu1 %602  ;;  %1656 = vmatpush3.bf16.msra.mxu1 %v1653_v8 }
 0x104   : > { %v601_v19 = vpop.permute.xlu0 %600  ;;  %v727_v22 = vsel %vm719_vm8, %v718_v18, %v603_v14  ;;  %1658 = vmatprep.subr.bf16.mxu1 %v1657_v13 }
 0x105   : > { %v726_v32 = vsel %vm719_vm8, %v717_v31, %v601_v19 }
 0x107   : > { %v635_v27 = vpop.permute.xlu1 %634  ;;  %1660 = vmatpush3.bf16.msra.mxu1 %v1657_v13 }
 0x108   : > { %v633_v28 = vpop.permute.xlu0 %632  ;;  %v736_v33 = vsel %vm728_vm9, %v727_v22, %v635_v27  ;;  %1623 = vmatprep.subr.mxu1 %v1314_v17 }
 0x109   : > { %v735_v34 = vsel %vm728_vm9, %v726_v32, %v633_v28 }
 0x10b   : > { %v667_v35 = vpop.permute.xlu1 %666  ;;  %1624 = vmatpush3.msra.mxu1 %v1314_v17 }
 0x10c   : > { %v665_v61 = vpop.permute.xlu0 %664  ;;  %v745_v36 = vsel %vm737_vm10, %v736_v33, %v667_v35 }
 0x10d   : > { %v744_v37 = vsel %vm737_vm10, %v735_v34, %v665_v61 }
 0x10e   : > { %1604 = vmatprep.mubr.msk.f32.mxu0 %vm758_vm11, %v744_v37 }
 0x10f   : > { %1605 = vmatmul.mubr.msk.f32.gmra.mrb[6].mxu0 %vm758_vm11, %v745_v36 }
 0x14f   : > { %v2192_v37 = vpop.permute.xlu1 %1164 }
 0x153   : > { %v2201_v40 = vpop.permute.xlu1 %1196 }
 0x194   : > { %v1597_v0 = vpop.f32.mrb[0].mxu0 }
 0x195   : > { %v859_v44 = vadd.f32 %v1597_v0, %v2076_v43  ;;  %v853_v46 = vpop.f32.mrb[1].mxu0  ;;  %v981_v0 = vld [vmem:[#allocation3 + $0x92] sm:$0xff] }
 0x196   : > { %v854_v47 = vadd.f32 %v2076_v43, %v853_v46 }
 0x197   : > { %v893_v6 = vmax.f32 %v859_v44, 0.0 }
 0x198   : > { %v892_v41 = vmax.f32 %v854_v47, 0.0 }
 0x199   : > { %902 = vst.msk [vmem:[#allocation3 + $0x21] sm:$0xff] %vm254_vm3, %v893_v6 }
 0x19a   : > { %901 = vst.msk [vmem:[#allocation3 + $0x11] sm:$0xff] %vm254_vm3, %v892_v41 }
 0x1a0   : > { %v942_v45 = vld [vmem:[#allocation3 + $0x21] sm:$0xff] }
 0x1a1   : > { %v2082_v48 = vld [vmem:[#allocation3 + $0x20] sm:$0xff]  ;;  %1088 = vrot.lane.b32.xlu0 %v942_v45, %s1698_s17  ;;  %v2089_v50 = vld [vmem:[#allocation3 + $0x10] sm:$0xff] }
 0x1a2   : > { %1056 = vrot.lane.b32.xlu1 %v2082_v48, %s1696_s9  ;;  %v950_v49 = vld [vmem:[#allocation3 + $0x22] sm:$0xff]  ;;  %v941_v51 = vld [vmem:[#allocation3 + $0x11] sm:$0xff] }
 0x1a3   : > { %v926_v58 = vld [vmem:[#allocation3 + $0x12] sm:$0xff] }
 0x1a5   : > { %1120 = vrot.lane.b32.xlu0 %v950_v49, %s1701_s24 }
 0x1a6   : > { %994 = vrot.lane.b32.xlu1 %v942_v45, %s1692_s26 }
 0x1a9   : > { %1054 = vrot.lane.b32.xlu0 %v2089_v50, %s1696_s9 }
 0x1aa   : > { %1026 = vrot.lane.b32.xlu1 %v950_v49, %s1694_s28 }
 0x1ad   : > { %1086 = vrot.lane.b32.xlu0 %v941_v51, %s1698_s17 }
 0x1ae   : > { %1150 = vrot.lane.b32.xlu1 %v2082_v48, %s1699_s20 }
 0x1b2   : > { %1182 = vrot.lane.b32.xlu1 %v942_v45, %s1700_s21 }
 0x1b4   : > { %v1600_v52 = vpop.f32.mrb[2].mxu0 }
 0x1b5   : > { %v869_v53 = vadd.f32 %v1600_v52, %v2076_v43  ;;  %v863_v54 = vpop.f32.mrb[3].mxu0 }
 0x1b6   : > { %1214 = vrot.lane.b32.xlu1 %v950_v49, %s1702_s25  ;;  %v864_v55 = vadd.f32 %v2076_v43, %v863_v54 }
 0x1b7   : > { %v895_v56 = vmax.f32 %v869_v53, 0.0  ;;  %v909_v53 = vld [vmem:[#allocation3] sm:$0xff] }
 0x1b8   : > { %v894_v57 = vmax.f32 %v864_v55, 0.0 }
 0x1b9   : > { %904 = vst.msk [vmem:[#allocation3 + $0x41] sm:$0xff] %vm254_vm3, %v895_v56 }
 0x1ba   : > { %992 = vrot.lane.b32.xlu1 %v941_v51, %s1692_s26  ;;  %903 = vst.msk [vmem:[#allocation3 + $0x31] sm:$0xff] %vm254_vm3, %v894_v57 }
 0x1be   : > { %1024 = vrot.lane.b32.xlu1 %v926_v58, %s1694_s28 }
 0x1c0   : > { %v2105_v59 = vld [vmem:[#allocation3 + $0x40] sm:$0xff] }
 0x1c1   : > { %1060 = vrot.lane.b32.xlu0 %v2105_v59, %s1696_s9  ;;  %v921_v2 = vld [vmem:[#allocation3 + $0x41] sm:$0xff]  ;;  %v920_v9 = vld [vmem:[#allocation3 + $0x31] sm:$0xff] }
 0x1c2   : > { %1118 = vrot.lane.b32.xlu1 %v926_v58, %s1701_s24  ;;  %v952_v4 = vld [vmem:[#allocation3 + $0x42] sm:$0xff]  ;;  %v928_v15 = vld [vmem:[#allocation3 + $0x32] sm:$0xff] }
 0x1c3   : > { %v2146_v14 = vld [vmem:[#allocation3 + $0x30] sm:$0xff] }
 0x1c5   : > { %998 = vrot.lane.b32.xlu0 %v921_v2, %s1692_s26 }
 0x1c6   : > { %1092 = vrot.lane.b32.xlu1 %v921_v2, %s1698_s17 }
 0x1c9   : > { %1124 = vrot.lane.b32.xlu0 %v952_v4, %s1701_s24 }
 0x1ca   : > { %1030 = vrot.lane.b32.xlu1 %v952_v4, %s1694_s28 }
 0x1cd   : > { %996 = vrot.lane.b32.xlu0 %v920_v9, %s1692_s26 }
 0x1ce   : > { %1154 = vrot.lane.b32.xlu1 %v2105_v59, %s1699_s20 }
 0x1d1   : > { %1028 = vrot.lane.b32.xlu0 %v928_v15, %s1694_s28 }
 0x1d2   : > { %1186 = vrot.lane.b32.xlu1 %v921_v2, %s1700_s21 }
 0x1d5   : > { %v1603_v16 = vpop.f32.mrb[4].mxu0  ;;  %1152 = vrot.lane.b32.xlu0 %v2146_v14, %s1699_s20 }
 0x1d6   : > { %v879_v19 = vadd.f32 %v1603_v16, %v2076_v43  ;;  %v873_v20 = vpop.f32.mrb[5].mxu0  ;;  %1218 = vrot.lane.b32.xlu1 %v952_v4, %s1702_s25 }
 0x1d7   : > { %v874_v21 = vadd.f32 %v2076_v43, %v873_v20 }
 0x1d8   : > { %v897_v23 = vmax.f32 %v879_v19, 0.0 }
 0x1d9   : > { %v896_v24 = vmax.f32 %v874_v21, 0.0  ;;  %1184 = vrot.lane.b32.xlu0 %v920_v9, %s1700_s21 }
 0x1da   : > { %906 = vst.msk [vmem:[#allocation3 + $0x61] sm:$0xff] %vm254_vm3, %v897_v23  ;;  %1058 = vrot.lane.b32.xlu1 %v2146_v14, %s1696_s9 }
 0x1db   : > { %905 = vst.msk [vmem:[#allocation3 + $0x51] sm:$0xff] %vm254_vm3, %v896_v24 }
 0x1dd   : > { %1122 = vrot.lane.b32.xlu0 %v928_v15, %s1701_s24 }
 0x1de   : > { %1090 = vrot.lane.b32.xlu1 %v920_v9, %s1698_s17 }
 0x1e1   : > { %v2160_v25 = vld [vmem:[#allocation3 + $0x60] sm:$0xff] }
 0x1e2   : > { %v1606_v26 = vpop.f32.mrb[6].mxu0  ;;  %1064 = vrot.lane.b32.xlu0 %v2160_v25, %s1696_s9  ;;  %1216 = vrot.lane.b32.xlu1 %v928_v15, %s1702_s25  ;;  %v923_v31 = vld [vmem:[#allocation3 + $0x61] sm:$0xff]  ;;  %v922_v32 = vld [vmem:[#allocation3 + $0x51] sm:$0xff] }
 0x1e3   : > { %v889_v27 = vadd.f32 %v1606_v26, %v2076_v43  ;;  %v883_v28 = vpop.f32.mrb[7].mxu0  ;;  %v954_v22 = vld [vmem:[#allocation3 + $0x62] sm:$0xff]  ;;  %v930_v33 = vld [vmem:[#allocation3 + $0x52] sm:$0xff] }
 0x1e4   : > { %v884_v29 = vadd.f32 %v2076_v43, %v883_v28  ;;  %v2178_v34 = vld [vmem:[#allocation3 + $0x50] sm:$0xff]  ;;  %v991_v43 = vpop.permute.xlu0 %990 }
 0x1e5   : > { %v899_v30 = vmax.f32 %v889_v27, 0.0  ;;  %v1238_v56 = vsel %vm254_vm3, %v909_v53, %v991_v43 }
 0x1e6   : > { %v898_v18 = vmax.f32 %v884_v29, 0.0  ;;  %1002 = vrot.lane.b32.xlu0 %v923_v31, %s1692_s26  ;;  %1096 = vrot.lane.b32.xlu1 %v923_v31, %s1698_s17 }
 0x1e7   : > { %908 = vst.msk [vmem:[#allocation3 + $0x81] sm:$0xff] %vm254_vm3, %v899_v30 }
 0x1e8   : > { %907 = vst.msk [vmem:[#allocation3 + $0x71] sm:$0xff] %vm254_vm3, %v898_v18  ;;  %v1023_v46 = vpop.permute.xlu0 %1022 }
 0x1e9   : > { %v1246_v57 = vsel %vm701_vm6, %v1238_v56, %v1023_v46 }
 0x1ea   : > { %1128 = vrot.lane.b32.xlu0 %v954_v22, %s1701_s24  ;;  %1034 = vrot.lane.b32.xlu1 %v954_v22, %s1694_s28 }
 0x1ee   : > { %1000 = vrot.lane.b32.xlu0 %v922_v32, %s1692_s26  ;;  %1158 = vrot.lane.b32.xlu1 %v2160_v25, %s1699_s20  ;;  %v940_v35 = vld [vmem:[#allocation3 + $0x80] sm:$0xff] }
 0x1ef   : > { %v948_v61 = vld [vmem:[#allocation3 + $0x81] sm:$0xff]  ;;  %v2194_v38 = vld [vmem:[#allocation3 + $0x70] sm:$0xff] }
 0x1f0   : > { %v956_v36 = vld [vmem:[#allocation3 + $0x82] sm:$0xff]  ;;  %v947_v39 = vld [vmem:[#allocation3 + $0x71] sm:$0xff] }
 0x1f1   : > { %v955_v42 = vld [vmem:[#allocation3 + $0x72] sm:$0xff] }
 0x1f2   : > { %1032 = vrot.lane.b32.xlu0 %v930_v33, %s1694_s28  ;;  %1190 = vrot.lane.b32.xlu1 %v923_v31, %s1700_s21 }
 0x1f6   : > { %1156 = vrot.lane.b32.xlu0 %v2178_v34, %s1699_s20  ;;  %1222 = vrot.lane.b32.xlu1 %v954_v22, %s1702_s25 }
 0x1fa   : > { %1188 = vrot.lane.b32.xlu0 %v922_v32, %s1700_s21  ;;  %1062 = vrot.lane.b32.xlu1 %v2178_v34, %s1696_s9 }
 0x1fe   : > { %1126 = vrot.lane.b32.xlu0 %v930_v33, %s1701_s24  ;;  %1094 = vrot.lane.b32.xlu1 %v922_v32, %s1698_s17 }
 0x202   : > { %1068 = vrot.lane.b32.xlu0 %v940_v35, %s1696_s9  ;;  %1220 = vrot.lane.b32.xlu1 %v930_v33, %s1702_s25 }
 0x206   : > { %1100 = vrot.lane.b32.xlu0 %v948_v61, %s1698_s17  ;;  %1132 = vrot.lane.b32.xlu1 %v956_v36, %s1701_s24 }
 0x20a   : > { %1162 = vrot.lane.b32.xlu0 %v940_v35, %s1699_s20  ;;  %1066 = vrot.lane.b32.xlu1 %v2194_v38, %s1696_s9 }
 0x20e   : > { %1194 = vrot.lane.b32.xlu0 %v948_v61, %s1700_s21  ;;  %1098 = vrot.lane.b32.xlu1 %v947_v39, %s1698_s17 }
 0x212   : > { %1004 = vrot.lane.b32.xlu0 %v947_v39, %s1692_s26  ;;  %1130 = vrot.lane.b32.xlu1 %v955_v42, %s1701_s24  ;;  %s1531_s26 = sshll.u32 %s1739_s19, 3 }
 0x213   : > { %v1089_v41 = vpop.permute.xlu0 %1088  ;;  %p221_p4 = scmp.lt.s32.totalorder %s1531_s26, 15 }
 0x214   : > { %v1057_v44 = vpop.permute.xlu1 %1056 }
 0x215   : > { %s2318_s26 = smov (!%p221_p4, %s1531_s26), 15 }
 0x216   : > { %1036 = vrot.lane.b32.xlu0 %v955_v42, %s1694_s28  ;;  %1228 = vrot.lane.b32.xlu1 %v981_v0, %s1702_s25  ;;  %s1532_s17 = sshll.u32 %s2318_s26, 3 }
 0x217   : > { %v1121_v49 = vpop.permute.xlu0 %1120  ;;  %s224_s24 = scalar_lea.vmem %s2316_s5, %s1532_s17 }
 0x218   : > { %v995_v47 = vpop.permute.xlu1 %994 }
 0x219   : > { %v1240_v27 = vsel %vm254_vm3, %v2082_v48, %v995_v47 }
 0x21a   : > { %1160 = vrot.lane.b32.xlu0 %v2194_v38, %s1699_s20 }
 0x21b   : > { %v1055_v54 = vpop.permute.xlu0 %1054 }
 0x21c   : > { %v1027_v6 = vpop.permute.xlu1 %1026  ;;  %v1254_v63 = vsel %vm719_vm8, %v1246_v57, %v1055_v54 }
 0x21d   : > { %v1248_v28 = vsel %vm701_vm6, %v1240_v27, %v1027_v6 }
 0x21e   : > { %1192 = vrot.lane.b32.xlu0 %v947_v39, %s1700_s21 }
 0x21f   : > { %v1087_v58 = vpop.permute.xlu0 %1086 }
 0x220   : > { %v1151_v45 = vpop.permute.xlu1 %1150  ;;  %v1262_v1 = vsel %vm737_vm10, %v1254_v63, %v1087_v58 }
 0x222   : > { %1224 = vrot.lane.b32.xlu0 %v955_v42, %s1702_s25 }
 0x224   : > { %v1183_v51 = vpop.permute.xlu1 %1182 }
 0x226   : > { %1226 = vrot.lane.b32.xlu0 %v956_v36, %s1702_s25 }
 0x228   : > { %v1215_v52 = vpop.permute.xlu1 %1214 }
 0x22c   : > { %v993_v55 = vpop.permute.xlu1 %992 }
 0x22d   : > { %v1239_v16 = vsel %vm254_vm3, %v2089_v50, %v993_v55 }
 0x230   : > { %v1025_v60 = vpop.permute.xlu1 %1024 }
 0x231   : > { %v1247_v21 = vsel %vm701_vm6, %v1239_v16, %v1025_v60 }
 0x232   : > { %v1255_v23 = vsel %vm719_vm8, %v1247_v21, %v1057_v44 }
 0x233   : > { %v1061_v2 = vpop.permute.xlu0 %1060  ;;  %v1263_v29 = vsel %vm737_vm10, %v1255_v23, %v1089_v41 }
 0x234   : > { %v1119_v3 = vpop.permute.xlu1 %1118  ;;  %v1272_v22 = vsel %vm1270_vm14, %v1263_v29, %v1121_v49 }
 0x235   : > { %v1271_v5 = vsel %vm1270_vm14, %v1262_v1, %v1119_v3 }
 0x236   : > { %v1280_v12 = vsel %vm1279_vm15, %v1271_v5, %v1151_v45 }
 0x237   : > { %v1289_v4 = vsel %vm1288_vm0, %v1280_v12, %v1183_v51  ;;  %v999_v7 = vpop.permute.xlu0 %998 }
 0x238   : > { %v1093_v62 = vpop.permute.xlu1 %1092  ;;  %v1298_v8 = vsel %vm1297_vm1, %v1289_v4, %v1215_v52  ;;  %v1242_v58 = vsel %vm254_vm3, %v2105_v59, %v999_v7 }
 0x239   : > { %1625 = vmatprep.mubr.msk.f32.mxu1 %vm1322_vm2, %v1298_v8 }
 0x23b   : > { %v1125_v9 = vpop.permute.xlu0 %1124 }
 0x23c   : > { %v1031_v10 = vpop.permute.xlu1 %1030 }
 0x23d   : > { %v1250_v60 = vsel %vm701_vm6, %v1242_v58, %v1031_v10 }
 0x23f   : > { %v997_v11 = vpop.permute.xlu0 %996 }
 0x240   : > { %v1155_v13 = vpop.permute.xlu1 %1154  ;;  %v1241_v51 = vsel %vm254_vm3, %v2146_v14, %v997_v11 }
 0x243   : > { %v1029_v15 = vpop.permute.xlu0 %1028 }
 0x244   : > { %v1187_v17 = vpop.permute.xlu1 %1186  ;;  %v1249_v54 = vsel %vm701_vm6, %v1241_v51, %v1029_v15 }
 0x245   : > { %v1257_v55 = vsel %vm719_vm8, %v1249_v54, %v1061_v2 }
 0x246   : > { %v1265_v63 = vsel %vm737_vm10, %v1257_v55, %v1093_v62 }
 0x247   : > { %v1153_v19 = vpop.permute.xlu0 %1152  ;;  %v1274_v12 = vsel %vm1270_vm14, %v1265_v63, %v1125_v9 }
 0x248   : > { %v1219_v20 = vpop.permute.xlu1 %1218  ;;  %v1281_v33 = vsel %vm1279_vm15, %v1272_v22, %v1153_v19 }
 0x24b   : > { %v1185_v24 = vpop.permute.xlu0 %1184 }
 0x24c   : > { %v1059_v26 = vpop.permute.xlu1 %1058  ;;  %v1290_v48 = vsel %vm1288_vm0, %v1281_v33, %v1185_v24 }
 0x24d   : > { %v1256_v30 = vsel %vm719_vm8, %v1248_v28, %v1059_v26 }
 0x24f   : > { %v1123_v31 = vpop.permute.xlu0 %1122 }
 0x250   : > { %v1091_v18 = vpop.permute.xlu1 %1090 }
 0x251   : > { %v1264_v50 = vsel %vm737_vm10, %v1256_v30, %v1091_v18 }
 0x252   : > { %v1273_v32 = vsel %vm1270_vm14, %v1264_v50, %v1123_v31 }
 0x253   : > { %v1282_v35 = vsel %vm1279_vm15, %v1273_v32, %v1155_v13 }
 0x254   : > { %v1065_v61 = vpop.permute.xlu0 %1064  ;;  %v1217_v36 = vpop.permute.xlu1 %1216  ;;  %v1291_v39 = vsel %vm1288_vm0, %v1282_v35, %v1187_v17 }
 0x255   : > { %v1299_v42 = vsel %vm1297_vm1, %v1290_v48, %v1217_v36  ;;  %v1300_v43 = vsel %vm1297_vm1, %v1291_v39, %v1219_v20 }
 0x256   : > { %1626 = vmatmul.mubr.msk.f32.vlgmr.msra.gmra.mrb[0].mxu1 %vm1322_vm2, %v1299_v42 }
 0x257   : > { %1628 = vmatprep.mubr.msk.f32.mxu1 %vm1322_vm2, %v1300_v43 }
 0x258   : > { %v1003_v0 = vpop.permute.xlu0 %1002  ;;  %v1097_v44 = vpop.permute.xlu1 %1096 }
 0x259   : > { %v1244_v18 = vsel %vm254_vm3, %v2160_v25, %v1003_v0 }
 0x25c   : > { %v1129_v46 = vpop.permute.xlu0 %1128  ;;  %v1035_v47 = vpop.permute.xlu1 %1034 }
 0x260   : > { %v1001_v6 = vpop.permute.xlu0 %1000  ;;  %v1159_v41 = vpop.permute.xlu1 %1158 }
 0x261   : > { %v1243_v21 = vsel %vm254_vm3, %v2178_v34, %v1001_v6  ;;  %v1252_v34 = vsel %vm701_vm6, %v1244_v18, %v1035_v47 }
 0x264   : > { %v1033_v45 = vpop.permute.xlu0 %1032  ;;  %v1191_v49 = vpop.permute.xlu1 %1190 }
 0x265   : > { %v1251_v26 = vsel %vm701_vm6, %v1243_v21, %v1033_v45 }
 0x266   : > { %v1259_v30 = vsel %vm719_vm8, %v1251_v26, %v1065_v61 }
 0x268   : > { %v1157_v52 = vpop.permute.xlu0 %1156  ;;  %v1223_v53 = vpop.permute.xlu1 %1222 }
 0x269   : > { %v1283_v2 = vsel %vm1279_vm15, %v1274_v12, %v1157_v52 }
 0x26c   : > { %v1189_v56 = vpop.permute.xlu0 %1188  ;;  %v1063_v57 = vpop.permute.xlu1 %1062 }
 0x26d   : > { %v1258_v1 = vsel %vm719_vm8, %v1250_v60, %v1063_v57  ;;  %v1292_v59 = vsel %vm1288_vm0, %v1283_v2, %v1189_v56 }
 0x270   : > { %v1127_v3 = vpop.permute.xlu0 %1126  ;;  %v1095_v5 = vpop.permute.xlu1 %1094 }
 0x271   : > { %v1266_v14 = vsel %vm737_vm10, %v1258_v1, %v1095_v5 }
 0x272   : > { %v1275_v4 = vsel %vm1270_vm14, %v1266_v14, %v1127_v3 }
 0x273   : > { %v1284_v8 = vsel %vm1279_vm15, %v1275_v4, %v1159_v41 }
 0x274   : > { %v1069_v7 = vpop.permute.xlu0 %1068  ;;  %v1221_v10 = vpop.permute.xlu1 %1220  ;;  %v1293_v62 = vsel %vm1288_vm0, %v1284_v8, %v1191_v49  ;;  %v1543_v49 = vld [vmem:[%s2315_s4] ss:$0 sm:$0xff] }
 0x275   : > { %v1301_v11 = vsel %vm1297_vm1, %v1292_v59, %v1221_v10  ;;  %v1302_v13 = vsel %vm1297_vm1, %v1293_v62, %v1223_v53 }
 0x276   : > { %1629 = vmatmul.mubr.msk.f32.gmra.mrb[2].mxu1 %vm1322_vm2, %v1301_v11 }
 0x277   : > { %1631 = vmatprep.mubr.msk.f32.mxu1 %vm1322_vm2, %v1302_v13 }
 0x278   : > { %v1101_v9 = vpop.permute.xlu0 %1100  ;;  %v1133_v17 = vpop.permute.xlu1 %1132 }
 0x27c   : > { %v1163_v15 = vpop.permute.xlu0 %1162  ;;  %v1067_v19 = vpop.permute.xlu1 %1066 }
 0x27d   : > { %v1260_v32 = vsel %vm719_vm8, %v1252_v34, %v1067_v19 }
 0x280   : > { %v1195_v16 = vpop.permute.xlu0 %1194  ;;  %v1099_v27 = vpop.permute.xlu1 %1098 }
 0x281   : > { %v1268_v35 = vsel %vm737_vm10, %v1260_v32, %v1099_v27 }
 0x284   : > { %v1005_v20 = vpop.permute.xlu0 %1004  ;;  %v1131_v22 = vpop.permute.xlu1 %1130 }
 0x285   : > { %v1245_v23 = vsel %vm254_vm3, %v2194_v38, %v1005_v20  ;;  %v1267_v38 = vsel %vm737_vm10, %v1259_v30, %v1097_v44  ;;  %v1277_v61 = vsel %vm1270_vm14, %v1268_v35, %v1131_v22 }
 0x286   : > { %v1276_v36 = vsel %vm1270_vm14, %v1267_v38, %v1129_v46  ;;  %v1286_v0 = vsel %vm1279_vm15, %v1277_v61, %v1163_v15 }
 0x287   : > { %v1295_v41 = vsel %vm1288_vm0, %v1286_v0, %v1195_v16 }
 0x288   : > { %v1037_v24 = vpop.permute.xlu0 %1036  ;;  %v1229_v6 = vpop.permute.xlu1 %1228 }
 0x289   : > { %v1253_v28 = vsel %vm701_vm6, %v1245_v23, %v1037_v24 }
 0x28a   : > { %v1261_v29 = vsel %vm719_vm8, %v1253_v28, %v1069_v7 }
 0x28b   : > { %v1269_v50 = vsel %vm737_vm10, %v1261_v29, %v1101_v9 }
 0x28c   : > { %v1161_v31 = vpop.permute.xlu0 %1160  ;;  %v1278_v48 = vsel %vm1270_vm14, %v1269_v50, %v1133_v17 }
 0x28d   : > { %v1285_v25 = vsel %vm1279_vm15, %v1276_v36, %v1161_v31  ;;  %v1287_v39 = vsel %vm1279_vm15, %v1278_v48, %v2192_v37 }
 0x28e   : > { %v1296_v47 = vsel %vm1288_vm0, %v1287_v39, %v2201_v40 }
 0x28f   : > { %v1305_v37 = vsel %vm1297_vm1, %v1296_v47, %v1229_v6 }
 0x290   : > { %v1193_v33 = vpop.permute.xlu0 %1192 }
 0x291   : > { %v1294_v42 = vsel %vm1288_vm0, %v1285_v25, %v1193_v33 }
 0x294   : > { %v1225_v43 = vpop.permute.xlu0 %1224 }
 0x295   : > { %v1303_v44 = vsel %vm1297_vm1, %v1294_v42, %v1225_v43 }
 0x296   : > { %1632 = vmatmul.mubr.msk.f32.gmra.mrb[4].mxu1 %vm1322_vm2, %v1303_v44 }
 0x298   : > { %v1227_v46 = vpop.permute.xlu0 %1226 }
 0x299   : > { %v1304_v45 = vsel %vm1297_vm1, %v1295_v41, %v1227_v46 }
 0x29a   : > { %1634 = vmatprep.mubr.msk.f32.mxu1 %vm1322_vm2, %v1304_v45 }
 0x29b   : > { %1635 = vmatmul.mubr.msk.f32.gmra.mrb[6].mxu1 %vm1322_vm2, %v1305_v37 }
 0x329   : > { %v1627_v40 = vpop.f32.mrb[0].mxu1 }
 0x32a   : > { %v1419_v51 = vadd.f32 %v1627_v40, %v1543_v49  ;;  %v1413_v52 = vpop.f32.mrb[1].mxu1 }
 0x32b   : > { %v1414_v53 = vadd.f32 %v1543_v49, %v1413_v52 }
 0x32c   : > { %v1453_v54 = vmax.f32 %v1419_v51, 0.0 }
 0x32d   : > { %v1452_v55 = vmax.f32 %v1414_v53, 0.0 }
 0x32e   : > { %1461 = vst.msk [vmem:[%s224_s24 + $0x8] sm:$0xff] %vm254_vm3, %v1453_v54 }
 0x32f   : > { %1460 = vst.msk [vmem:[%s224_s24] sm:$0xff] %vm254_vm3, %v1452_v55 }
 0x349   : > { %v1630_v56 = vpop.f32.mrb[2].mxu1 }
 0x34a   : > { %v1429_v57 = vadd.f32 %v1630_v56, %v1543_v49  ;;  %v1423_v58 = vpop.f32.mrb[3].mxu1 }
 0x34b   : > { %v1424_v60 = vadd.f32 %v1543_v49, %v1423_v58 }
 0x34c   : > { %v1455_v63 = vmax.f32 %v1429_v57, 0.0 }
 0x34d   : > { %v1454_v1 = vmax.f32 %v1424_v60, 0.0 }
 0x34e   : > { %1463 = vst.msk [vmem:[%s224_s24 + $0x18] sm:$0xff] %vm254_vm3, %v1455_v63 }
 0x34f   : > { %1462 = vst.msk [vmem:[%s224_s24 + $0x10] sm:$0xff] %vm254_vm3, %v1454_v1 }
 0x369   : > { %v1633_v3 = vpop.f32.mrb[4].mxu1 }
 0x36a   : > { %v1439_v5 = vadd.f32 %v1633_v3, %v1543_v49  ;;  %v1433_v14 = vpop.f32.mrb[5].mxu1 }
 0x36b   : > { %v1434_v12 = vadd.f32 %v1543_v49, %v1433_v14 }
 0x36c   : > { %v1457_v4 = vmax.f32 %v1439_v5, 0.0 }
 0x36d   : > { %v1456_v2 = vmax.f32 %v1434_v12, 0.0 }
 0x36e   : > { %1465 = vst.msk [vmem:[%s224_s24 + $0x28] sm:$0xff] %vm254_vm3, %v1457_v4  ;;  %v1636_v8 = vpop.f32.mrb[6].mxu1 }
 0x36f   : > { %1464 = vst.msk [vmem:[%s224_s24 + $0x20] sm:$0xff] %vm254_vm3, %v1456_v2  ;;  %v1449_v59 = vadd.f32 %v1636_v8, %v1543_v49  ;;  %v1443_v7 = vpop.f32.mrb[7].mxu1 }
 0x370   : > { %v1444_v10 = vadd.f32 %v1543_v49, %v1443_v7 }
 0x371   : > { %v1459_v62 = vmax.f32 %v1449_v59, 0.0 }
 0x372   : > { %v1458_v11 = vmax.f32 %v1444_v10, 0.0 }
 0x373   : > { %1467 = vst.msk [vmem:[%s224_s24 + $0x38] sm:$0xff] %vm254_vm3, %v1459_v62 }
 0x374   : > { %1466 = vst.msk [vmem:[%s224_s24 + $0x30] sm:$0xff] %vm254_vm3, %v1458_v11 }
 0x375 PF: > { %s15_s18 = sadd.s32 1, %s1688_s18  }
 0x376   : > { %p12_p5 = scmp.ge.s32.totalorder %s15_s18, 4  }
 0x378   :  { %14 = sbr.rel (!%p12_p5) target bundleno = 1 (0x1), region = 76 }

</bundles_post_ra>
